<compile_context>
chip_gen: v6e
topology: v6e:2x2x1
jax: 0.10.0
libtpu: 0.0.40
codegen_flags: <defaults>
</compile_context>

<pallas_src>
import functools

import jax
import jax.numpy as jnp
from jax.experimental import pallas as pl
from jax.experimental.pallas import tpu as pltpu


def _round_up(x: int, m: int) -> int:
    return ((x + m - 1) // m) * m


def _cope_kernel(logits_ref, attn_ref, *rest, n_positions: int, block_q: int,
                 use_mxu_scan: bool):
    # logits_ref : [1, 1, Sqp, P]   (q @ position_emb, per-(b,h) resident block)
    # attn_ref   : [1, 1, block_q, Skp]
    # tri_ref    : [Skp, Skp]       (only when use_mxu_scan)
    # out_ref    : [1, 1, block_q, Skp]
    if use_mxu_scan:
        tri_ref, out_ref = rest
    else:
        (out_ref,) = rest

    attn = attn_ref[0, 0].astype(jnp.float32)           # [bq, Skp]
    bq, sk = attn.shape

    # Per-(b,h) logits block stays resident; slice this grid step's rows.
    i = pl.program_id(2)
    start = pl.multiple_of(i * block_q, block_q)
    logits_blk = logits_ref[0, 0, pl.ds(start, block_q), :].astype(jnp.float32)

    # sigmoid via tanh -> EUP slot (mathematically identical to sigmoid).
    gates = 0.5 * jnp.tanh(0.5 * attn) + 0.5

    if use_mxu_scan:
        # Suffix cumsum on the MXU: pos[i, j] = sum_{k >= j} gates[i, k]
        # tri[k, j] = 1 iff k >= j (lower-triangular incl. diagonal).
        tri = tri_ref[...]
        pos = jnp.dot(gates, tri, preferred_element_type=jnp.float32,
                      precision=jax.lax.Precision.HIGHEST)
    else:
        # Fallback for very large Sk: log2(Sk)-step Hillis-Steele suffix scan
        # (XLU lane rotate + masked add).  f32 iota per review (no int32 temp).
        lane = jax.lax.broadcasted_iota(jnp.float32, (bq, sk), 1)
        pos = gates
        d = 1
        while d < sk:
            shifted = pltpu.roll(pos, shift=sk - d, axis=1)
            pos = pos + jnp.where(lane < jnp.float32(sk - d), shifted, 0.0)
            d *= 2

    # clamp(max = n_positions - 1); gates > 0 so pos > 0 already.
    pos = jnp.minimum(pos, jnp.float32(n_positions - 1))

    fl = jnp.floor(pos)          # exact integers in f32
    w = pos - fl

    # Floor/ceil select-accumulation.  Masks (fl == p) are mutually exclusive;
    # the ceil accumulator reuses the previous iteration's mask (ceil(pos) ==
    # floor(pos) + 1 except when w == 0, where the ceil term is multiplied by
    # w == 0 anyway, so the approximation is exact in the output).
    acc_f = jnp.zeros_like(pos)
    acc_c = jnp.zeros_like(pos)
    prev_mask = None
    for p in range(n_positions):
        lp = logits_blk[:, p:p + 1]                      # [bq, 1], static slice
        mask = fl == jnp.float32(p)
        acc_f = jnp.where(mask, lp, acc_f)
        if prev_mask is not None:
            acc_c = jnp.where(prev_mask, lp, acc_c)
        prev_mask = mask

    out = attn + acc_f * (1.0 - w) + acc_c * w
    out_ref[0, 0] = out.astype(out_ref.dtype)


def _tpu_vmem_capacity_bytes(default: int = 64 << 20) -> int:
    try:
        return int(pltpu.get_tpu_info().vmem_capacity_bytes)
    except Exception:  # off-device tracing / API change: conservative fallback
        return default


def _choose_block_q(sq: int, skp: int, vmem_bytes: int, tri_bytes: int) -> int:
    """Pick a query-tile size that keeps the pipeline comfortably in VMEM.

    Divisor 48 (not 32) per v7x review: the unrolled interp loop keeps more
    live [block_q, Skp] f32 temporaries than the old estimate, and v7x has
    only 64 MiB VMEM per TC.  The (double-buffered) tri matrix is accounted
    for separately.
    """
    avail = max(vmem_bytes - tri_bytes, 1 << 20)
    budget = max(avail // 48, 64 << 10)
    bq = budget // (skp * 4)
    cap = 2048 if skp <= 256 else 512        # fatten grid steps for small Sk
    bq = min(max(bq, 8), cap)
    bq = (bq // 8) * 8                       # sublane-aligned for f32
    return min(bq, _round_up(sq, 8))


def cope_forward(q, attn_logits, position_emb, n_positions: int, *,
                 block_q: int | None = None,
                 vmem_bytes: int | None = None,
                 mxu_scan_max_sk: int = 1024):
    """Pallas CoPE forward.

    q:            [B, H, Sq, D]
    attn_logits:  [B, H, Sq, Sk]
    position_emb: [1, H, D, P]   (P = n_positions)
    returns:      [B, H, Sq, Sk]
    """
    B, H, Sq, D = q.shape
    Sk = attn_logits.shape[-1]
    P = position_emb.shape[-1]
    assert P == n_positions

    # Tiny lane-sparse matmul (P << 128 MXU columns): let XLA batch it over
    # B*H; the kernel only streams the big [Sq, Sk] tensors.
    logits_int = jnp.einsum("bhqd,ohdp->bhqp", q, position_emb)  # [B, H, Sq, P]

    Skp = _round_up(Sk, 128)                 # lane-dense output stores
    use_mxu_scan = Skp <= mxu_scan_max_sk
    tri_bytes = 2 * Skp * Skp * 4 if use_mxu_scan else 0

    if vmem_bytes is None:
        # TODO(synk): pass vmem_bytes explicitly when AOT-compiling off-device
        # for v5e/v6e so the 64 MiB fallback does not halve block_q there.
        vmem_bytes = _tpu_vmem_capacity_bytes()

    if block_q is None:
        block_q = _choose_block_q(Sq, Skp, vmem_bytes, tri_bytes)
    block_q = max(8, (min(block_q, _round_up(Sq, 8)) // 8) * 8)

    Sqp = _round_up(Sq, block_q)
    num_q_blocks = Sqp // block_q

    # Pad: Sk up to a multiple of 128 with a large negative (sigmoid -> 0, so
    # padded keys do not perturb the suffix cumsum of valid columns), and Sq
    # up to a multiple of block_q (rows are independent; padded rows are
    # discarded).  No-op at already-aligned shapes.
    if (Sqp, Skp) != (Sq, Sk):
        attn_p = jnp.pad(attn_logits,
                         ((0, 0), (0, 0), (0, Sqp - Sq), (0, Skp - Sk)),
                         constant_values=-1e9)
        logits_p = jnp.pad(logits_int,
                           ((0, 0), (0, 0), (0, Sqp - Sq), (0, 0)))
    else:
        attn_p, logits_p = attn_logits, logits_int

    kernel = functools.partial(_cope_kernel, n_positions=n_positions,
                               block_q=block_q, use_mxu_scan=use_mxu_scan)

    in_specs = [
        # Per-(b,h) resident block of interpolation logits (re-fetched only
        # when b/h changes).
        pl.BlockSpec((1, 1, Sqp, P), lambda b, h, i: (b, h, 0, 0)),
        pl.BlockSpec((1, 1, block_q, Skp), lambda b, h, i: (b, h, i, 0)),
    ]
    args = [logits_p, attn_p]
    if use_mxu_scan:
        tri = jnp.tril(jnp.ones((Skp, Skp), jnp.float32))
        in_specs.append(pl.BlockSpec((Skp, Skp), lambda b, h, i: (0, 0)))
        args.append(tri)

    out = pl.pallas_call(
        kernel,
        out_shape=jax.ShapeDtypeStruct((B, H, Sqp, Skp), attn_logits.dtype),
        grid_spec=pltpu.PrefetchScalarGridSpec(
            num_scalar_prefetch=0,
            grid=(B, H, num_q_blocks),
            in_specs=in_specs,
            out_specs=pl.BlockSpec((1, 1, block_q, Skp),
                                   lambda b, h, i: (b, h, i, 0)),
        ),
        compiler_params=pltpu.CompilerParams(
            dimension_semantics=("parallel", "parallel", "parallel"),
            vmem_limit_bytes=(vmem_bytes * 3) // 4,
        ),
    )(*args)

    if (Sqp, Skp) != (Sq, Sk):
        out = out[:, :, :Sq, :Sk]
    return out


def cope_reference(q, attn_logits, position_emb, n_positions: int):
    """Pure-JAX reference mirroring the PyTorch forward."""
    gates = jax.nn.sigmoid(attn_logits)
    pos = jnp.flip(jnp.cumsum(jnp.flip(gates, axis=-1), axis=-1), axis=-1)
    pos = jnp.minimum(pos, n_positions - 1)
    pos_ceil = jnp.ceil(pos).astype(jnp.int32)
    pos_floor = jnp.floor(pos).astype(jnp.int32)
    logits_int = jnp.einsum("bhqd,ohdp->bhqp", q, position_emb)
    logits_ceil = jnp.take_along_axis(logits_int, pos_ceil, axis=-1)
    logits_floor = jnp.take_along_axis(logits_int, pos_floor, axis=-1)
    w = pos - pos_floor
    return attn_logits + (logits_ceil * w + logits_floor * (1.0 - w))


if __name__ == "__main__":
    # Small but TPU-friendly synthetic problem (Sk = 128 keeps lane-dense
    # stores; block_q=64 exercises the Sq-tiled grid and the per-(b,h)
    # resident logits slice).
    B, H, Sq, Sk, D = 2, 4, 256, 128, 32
    n_positions = 16

    key = jax.random.PRNGKey(0)
    k_q, k_attn, k_emb = jax.random.split(key, 3)

    q = jax.random.normal(k_q, (B, H, Sq, D), dtype=jnp.float32)
    attn_logits = jax.random.normal(k_attn, (B, H, Sq, Sk), dtype=jnp.float32)
    # nn.Parameter(torch.randn([1, H, D, P]) * 0.02), deterministic init here.
    position_emb = (
        jax.random.normal(k_emb, (1, H, D, n_positions), dtype=jnp.float32) * 0.02)

    out = cope_forward(q, attn_logits, position_emb, n_positions, block_q=64)
    out = jax.block_until_ready(out)

    ref = cope_reference(q, attn_logits, position_emb, n_positions)
    ref = jax.block_until_ready(ref)

    assert out.shape == (B, H, Sq, Sk)
    if not jnp.allclose(out, ref, rtol=1e-4, atol=1e-4):
        max_err = float(jnp.max(jnp.abs(out - ref)))
        raise AssertionError(
            f"Pallas CoPE output mismatch vs reference (max abs err {max_err})")

    print("KERNEL_OK")
</pallas_src>

<mosaic_0001>
module attributes {stable_mosaic.version = 11 : i64} {
  func.func @_cope_kernel(%arg0: i32, %arg1: i32, %arg2: i32, %arg3: memref<1x1x256x16xf32, #tpu.memory_space<vmem>>, %arg4: memref<1x1x64x128xf32, #tpu.memory_space<vmem>>, %arg5: memref<128x128xf32, #tpu.memory_space<vmem>>, %arg6: memref<1x1x64x128xf32, #tpu.memory_space<vmem>>) attributes {dimension_semantics = [#tpu.dimension_semantics<parallel>, #tpu.dimension_semantics<parallel>, #tpu.dimension_semantics<parallel>], iteration_bounds = array<i64: 2, 4, 4>, scalar_prefetch = 0 : i64, scratch_operands = 0 : i64, tpu.core_type = #tpu.core_type<tc>, window_params = [{transform_indices = @transform_0, window_bounds = array<i64: 1, 1, 256, 16>}, {transform_indices = @transform_1, window_bounds = array<i64: 1, 1, 64, 128>}, {pipeline_mode = #tpu.pipeline_mode<synchronous>, transform_indices = @transform_2, window_bounds = array<i64: 128, 128>}, {transform_indices = @transform_3, window_bounds = array<i64: 1, 1, 64, 128>}]} {
    %c0 = arith.constant 0 : index
    %c0_0 = arith.constant 0 : index
    %c0_1 = arith.constant 0 : index
    %c0_2 = arith.constant 0 : index
    %0 = vector.load %arg4[%c0, %c0_0, %c0_1, %c0_2] : memref<1x1x64x128xf32, #tpu.memory_space<vmem>>, vector<1x1x64x128xf32>
    %1 = vector.shape_cast %0 : vector<1x1x64x128xf32> to vector<64x128xf32>
    %c64_i32 = arith.constant 64 : i32
    %2 = arith.muli %arg2, %c64_i32 : i32
    %3 = tpu.assume_multiple %2, 64 : i32
    %c0_3 = arith.constant 0 : index
    %c0_4 = arith.constant 0 : index
    %4 = arith.index_cast %3 : i32 to index
    %c0_5 = arith.constant 0 : index
    %5 = vector.load %arg3[%c0_3, %c0_4, %4, %c0_5] : memref<1x1x256x16xf32, #tpu.memory_space<vmem>>, vector<1x1x64x16xf32>
    %6 = vector.shape_cast %5 : vector<1x1x64x16xf32> to vector<64x16xf32>
    %cst = arith.constant 5.000000e-01 : f32
    %7 = vector.broadcast %cst : f32 to vector<64x128xf32>
    %8 = arith.mulf %7, %1 : vector<64x128xf32>
    %9 = math.tanh %8 : vector<64x128xf32>
    %cst_6 = arith.constant 5.000000e-01 : f32
    %10 = vector.broadcast %cst_6 : f32 to vector<64x128xf32>
    %11 = arith.mulf %10, %9 : vector<64x128xf32>
    %cst_7 = arith.constant 5.000000e-01 : f32
    %12 = vector.broadcast %cst_7 : f32 to vector<64x128xf32>
    %13 = arith.addf %11, %12 : vector<64x128xf32>
    %c0_8 = arith.constant 0 : index
    %c0_9 = arith.constant 0 : index
    %14 = vector.load %arg5[%c0_8, %c0_9] : memref<128x128xf32, #tpu.memory_space<vmem>>, vector<128x128xf32>
    %cst_10 = arith.constant dense<0.000000e+00> : vector<64x128xf32>
    %15 = tpu.matmul %13, %14, %cst_10 {dimension_numbers = #tpu.dot_dimension_numbers<[1], [0], [0], [1], [0, 0, 1, 1], [], []>, precision = #tpu.contract_precision<fp32>} : vector<64x128xf32>, vector<128x128xf32>, vector<64x128xf32> -> vector<64x128xf32>
    %cst_11 = arith.constant 1.500000e+01 : f32
    %16 = vector.broadcast %cst_11 : f32 to vector<64x128xf32>
    %17 = arith.minimumf %15, %16 : vector<64x128xf32>
    %18 = math.floor %17 : vector<64x128xf32>
    %19 = arith.subf %17, %18 : vector<64x128xf32>
    %cst_12 = arith.constant 0.000000e+00 : f32
    %20 = vector.broadcast %cst_12 : f32 to vector<64x128xf32>
    %cst_13 = arith.constant 0.000000e+00 : f32
    %21 = vector.broadcast %cst_13 : f32 to vector<64x128xf32>
    %22 = vector.extract_strided_slice %6 {offsets = [0, 0], sizes = [64, 1], strides = [1, 1]} : vector<64x16xf32> to vector<64x1xf32>
    %cst_14 = arith.constant 0.000000e+00 : f32
    %23 = vector.broadcast %cst_14 : f32 to vector<64x128xf32>
    %24 = arith.cmpf oeq, %18, %23 : vector<64x128xf32>
    %25 = vector.shape_cast %22 : vector<64x1xf32> to vector<64x1xf32>
    %26 = vector.broadcast %25 : vector<64x1xf32> to vector<64x128xf32>
    %27 = arith.select %24, %26, %20 : vector<64x128xi1>, vector<64x128xf32>
    %28 = vector.extract_strided_slice %6 {offsets = [0, 1], sizes = [64, 1], strides = [1, 1]} : vector<64x16xf32> to vector<64x1xf32>
    %cst_15 = arith.constant 1.000000e+00 : f32
    %29 = vector.broadcast %cst_15 : f32 to vector<64x128xf32>
    %30 = arith.cmpf oeq, %18, %29 : vector<64x128xf32>
    %31 = vector.shape_cast %28 : vector<64x1xf32> to vector<64x1xf32>
    %32 = vector.broadcast %31 : vector<64x1xf32> to vector<64x128xf32>
    %33 = arith.select %30, %32, %27 : vector<64x128xi1>, vector<64x128xf32>
    %34 = vector.shape_cast %28 : vector<64x1xf32> to vector<64x1xf32>
    %35 = vector.broadcast %34 : vector<64x1xf32> to vector<64x128xf32>
    %36 = arith.select %24, %35, %21 : vector<64x128xi1>, vector<64x128xf32>
    %37 = vector.extract_strided_slice %6 {offsets = [0, 2], sizes = [64, 1], strides = [1, 1]} : vector<64x16xf32> to vector<64x1xf32>
    %cst_16 = arith.constant 2.000000e+00 : f32
    %38 = vector.broadcast %cst_16 : f32 to vector<64x128xf32>
    %39 = arith.cmpf oeq, %18, %38 : vector<64x128xf32>
    %40 = vector.shape_cast %37 : vector<64x1xf32> to vector<64x1xf32>
    %41 = vector.broadcast %40 : vector<64x1xf32> to vector<64x128xf32>
    %42 = arith.select %39, %41, %33 : vector<64x128xi1>, vector<64x128xf32>
    %43 = vector.shape_cast %37 : vector<64x1xf32> to vector<64x1xf32>
    %44 = vector.broadcast %43 : vector<64x1xf32> to vector<64x128xf32>
    %45 = arith.select %30, %44, %36 : vector<64x128xi1>, vector<64x128xf32>
    %46 = vector.extract_strided_slice %6 {offsets = [0, 3], sizes = [64, 1], strides = [1, 1]} : vector<64x16xf32> to vector<64x1xf32>
    %cst_17 = arith.constant 3.000000e+00 : f32
    %47 = vector.broadcast %cst_17 : f32 to vector<64x128xf32>
    %48 = arith.cmpf oeq, %18, %47 : vector<64x128xf32>
    %49 = vector.shape_cast %46 : vector<64x1xf32> to vector<64x1xf32>
    %50 = vector.broadcast %49 : vector<64x1xf32> to vector<64x128xf32>
    %51 = arith.select %48, %50, %42 : vector<64x128xi1>, vector<64x128xf32>
    %52 = vector.shape_cast %46 : vector<64x1xf32> to vector<64x1xf32>
    %53 = vector.broadcast %52 : vector<64x1xf32> to vector<64x128xf32>
    %54 = arith.select %39, %53, %45 : vector<64x128xi1>, vector<64x128xf32>
    %55 = vector.extract_strided_slice %6 {offsets = [0, 4], sizes = [64, 1], strides = [1, 1]} : vector<64x16xf32> to vector<64x1xf32>
    %cst_18 = arith.constant 4.000000e+00 : f32
    %56 = vector.broadcast %cst_18 : f32 to vector<64x128xf32>
    %57 = arith.cmpf oeq, %18, %56 : vector<64x128xf32>
    %58 = vector.shape_cast %55 : vector<64x1xf32> to vector<64x1xf32>
    %59 = vector.broadcast %58 : vector<64x1xf32> to vector<64x128xf32>
    %60 = arith.select %57, %59, %51 : vector<64x128xi1>, vector<64x128xf32>
    %61 = vector.shape_cast %55 : vector<64x1xf32> to vector<64x1xf32>
    %62 = vector.broadcast %61 : vector<64x1xf32> to vector<64x128xf32>
    %63 = arith.select %48, %62, %54 : vector<64x128xi1>, vector<64x128xf32>
    %64 = vector.extract_strided_slice %6 {offsets = [0, 5], sizes = [64, 1], strides = [1, 1]} : vector<64x16xf32> to vector<64x1xf32>
    %cst_19 = arith.constant 5.000000e+00 : f32
    %65 = vector.broadcast %cst_19 : f32 to vector<64x128xf32>
    %66 = arith.cmpf oeq, %18, %65 : vector<64x128xf32>
    %67 = vector.shape_cast %64 : vector<64x1xf32> to vector<64x1xf32>
    %68 = vector.broadcast %67 : vector<64x1xf32> to vector<64x128xf32>
    %69 = arith.select %66, %68, %60 : vector<64x128xi1>, vector<64x128xf32>
    %70 = vector.shape_cast %64 : vector<64x1xf32> to vector<64x1xf32>
    %71 = vector.broadcast %70 : vector<64x1xf32> to vector<64x128xf32>
    %72 = arith.select %57, %71, %63 : vector<64x128xi1>, vector<64x128xf32>
    %73 = vector.extract_strided_slice %6 {offsets = [0, 6], sizes = [64, 1], strides = [1, 1]} : vector<64x16xf32> to vector<64x1xf32>
    %cst_20 = arith.constant 6.000000e+00 : f32
    %74 = vector.broadcast %cst_20 : f32 to vector<64x128xf32>
    %75 = arith.cmpf oeq, %18, %74 : vector<64x128xf32>
    %76 = vector.shape_cast %73 : vector<64x1xf32> to vector<64x1xf32>
    %77 = vector.broadcast %76 : vector<64x1xf32> to vector<64x128xf32>
    %78 = arith.select %75, %77, %69 : vector<64x128xi1>, vector<64x128xf32>
    %79 = vector.shape_cast %73 : vector<64x1xf32> to vector<64x1xf32>
    %80 = vector.broadcast %79 : vector<64x1xf32> to vector<64x128xf32>
    %81 = arith.select %66, %80, %72 : vector<64x128xi1>, vector<64x128xf32>
    %82 = vector.extract_strided_slice %6 {offsets = [0, 7], sizes = [64, 1], strides = [1, 1]} : vector<64x16xf32> to vector<64x1xf32>
    %cst_21 = arith.constant 7.000000e+00 : f32
    %83 = vector.broadcast %cst_21 : f32 to vector<64x128xf32>
    %84 = arith.cmpf oeq, %18, %83 : vector<64x128xf32>
    %85 = vector.shape_cast %82 : vector<64x1xf32> to vector<64x1xf32>
    %86 = vector.broadcast %85 : vector<64x1xf32> to vector<64x128xf32>
    %87 = arith.select %84, %86, %78 : vector<64x128xi1>, vector<64x128xf32>
    %88 = vector.shape_cast %82 : vector<64x1xf32> to vector<64x1xf32>
    %89 = vector.broadcast %88 : vector<64x1xf32> to vector<64x128xf32>
    %90 = arith.select %75, %89, %81 : vector<64x128xi1>, vector<64x128xf32>
    %91 = vector.extract_strided_slice %6 {offsets = [0, 8], sizes = [64, 1], strides = [1, 1]} : vector<64x16xf32> to vector<64x1xf32>
    %cst_22 = arith.constant 8.000000e+00 : f32
    %92 = vector.broadcast %cst_22 : f32 to vector<64x128xf32>
    %93 = arith.cmpf oeq, %18, %92 : vector<64x128xf32>
    %94 = vector.shape_cast %91 : vector<64x1xf32> to vector<64x1xf32>
    %95 = vector.broadcast %94 : vector<64x1xf32> to vector<64x128xf32>
    %96 = arith.select %93, %95, %87 : vector<64x128xi1>, vector<64x128xf32>
    %97 = vector.shape_cast %91 : vector<64x1xf32> to vector<64x1xf32>
    %98 = vector.broadcast %97 : vector<64x1xf32> to vector<64x128xf32>
    %99 = arith.select %84, %98, %90 : vector<64x128xi1>, vector<64x128xf32>
    %100 = vector.extract_strided_slice %6 {offsets = [0, 9], sizes = [64, 1], strides = [1, 1]} : vector<64x16xf32> to vector<64x1xf32>
    %cst_23 = arith.constant 9.000000e+00 : f32
    %101 = vector.broadcast %cst_23 : f32 to vector<64x128xf32>
    %102 = arith.cmpf oeq, %18, %101 : vector<64x128xf32>
    %103 = vector.shape_cast %100 : vector<64x1xf32> to vector<64x1xf32>
    %104 = vector.broadcast %103 : vector<64x1xf32> to vector<64x128xf32>
    %105 = arith.select %102, %104, %96 : vector<64x128xi1>, vector<64x128xf32>
    %106 = vector.shape_cast %100 : vector<64x1xf32> to vector<64x1xf32>
    %107 = vector.broadcast %106 : vector<64x1xf32> to vector<64x128xf32>
    %108 = arith.select %93, %107, %99 : vector<64x128xi1>, vector<64x128xf32>
    %109 = vector.extract_strided_slice %6 {offsets = [0, 10], sizes = [64, 1], strides = [1, 1]} : vector<64x16xf32> to vector<64x1xf32>
    %cst_24 = arith.constant 1.000000e+01 : f32
    %110 = vector.broadcast %cst_24 : f32 to vector<64x128xf32>
    %111 = arith.cmpf oeq, %18, %110 : vector<64x128xf32>
    %112 = vector.shape_cast %109 : vector<64x1xf32> to vector<64x1xf32>
    %113 = vector.broadcast %112 : vector<64x1xf32> to vector<64x128xf32>
    %114 = arith.select %111, %113, %105 : vector<64x128xi1>, vector<64x128xf32>
    %115 = vector.shape_cast %109 : vector<64x1xf32> to vector<64x1xf32>
    %116 = vector.broadcast %115 : vector<64x1xf32> to vector<64x128xf32>
    %117 = arith.select %102, %116, %108 : vector<64x128xi1>, vector<64x128xf32>
    %118 = vector.extract_strided_slice %6 {offsets = [0, 11], sizes = [64, 1], strides = [1, 1]} : vector<64x16xf32> to vector<64x1xf32>
    %cst_25 = arith.constant 1.100000e+01 : f32
    %119 = vector.broadcast %cst_25 : f32 to vector<64x128xf32>
    %120 = arith.cmpf oeq, %18, %119 : vector<64x128xf32>
    %121 = vector.shape_cast %118 : vector<64x1xf32> to vector<64x1xf32>
    %122 = vector.broadcast %121 : vector<64x1xf32> to vector<64x128xf32>
    %123 = arith.select %120, %122, %114 : vector<64x128xi1>, vector<64x128xf32>
    %124 = vector.shape_cast %118 : vector<64x1xf32> to vector<64x1xf32>
    %125 = vector.broadcast %124 : vector<64x1xf32> to vector<64x128xf32>
    %126 = arith.select %111, %125, %117 : vector<64x128xi1>, vector<64x128xf32>
    %127 = vector.extract_strided_slice %6 {offsets = [0, 12], sizes = [64, 1], strides = [1, 1]} : vector<64x16xf32> to vector<64x1xf32>
    %cst_26 = arith.constant 1.200000e+01 : f32
    %128 = vector.broadcast %cst_26 : f32 to vector<64x128xf32>
    %129 = arith.cmpf oeq, %18, %128 : vector<64x128xf32>
    %130 = vector.shape_cast %127 : vector<64x1xf32> to vector<64x1xf32>
    %131 = vector.broadcast %130 : vector<64x1xf32> to vector<64x128xf32>
    %132 = arith.select %129, %131, %123 : vector<64x128xi1>, vector<64x128xf32>
    %133 = vector.shape_cast %127 : vector<64x1xf32> to vector<64x1xf32>
    %134 = vector.broadcast %133 : vector<64x1xf32> to vector<64x128xf32>
    %135 = arith.select %120, %134, %126 : vector<64x128xi1>, vector<64x128xf32>
    %136 = vector.extract_strided_slice %6 {offsets = [0, 13], sizes = [64, 1], strides = [1, 1]} : vector<64x16xf32> to vector<64x1xf32>
    %cst_27 = arith.constant 1.300000e+01 : f32
    %137 = vector.broadcast %cst_27 : f32 to vector<64x128xf32>
    %138 = arith.cmpf oeq, %18, %137 : vector<64x128xf32>
    %139 = vector.shape_cast %136 : vector<64x1xf32> to vector<64x1xf32>
    %140 = vector.broadcast %139 : vector<64x1xf32> to vector<64x128xf32>
    %141 = arith.select %138, %140, %132 : vector<64x128xi1>, vector<64x128xf32>
    %142 = vector.shape_cast %136 : vector<64x1xf32> to vector<64x1xf32>
    %143 = vector.broadcast %142 : vector<64x1xf32> to vector<64x128xf32>
    %144 = arith.select %129, %143, %135 : vector<64x128xi1>, vector<64x128xf32>
    %145 = vector.extract_strided_slice %6 {offsets = [0, 14], sizes = [64, 1], strides = [1, 1]} : vector<64x16xf32> to vector<64x1xf32>
    %cst_28 = arith.constant 1.400000e+01 : f32
    %146 = vector.broadcast %cst_28 : f32 to vector<64x128xf32>
    %147 = arith.cmpf oeq, %18, %146 : vector<64x128xf32>
    %148 = vector.shape_cast %145 : vector<64x1xf32> to vector<64x1xf32>
    %149 = vector.broadcast %148 : vector<64x1xf32> to vector<64x128xf32>
    %150 = arith.select %147, %149, %141 : vector<64x128xi1>, vector<64x128xf32>
    %151 = vector.shape_cast %145 : vector<64x1xf32> to vector<64x1xf32>
    %152 = vector.broadcast %151 : vector<64x1xf32> to vector<64x128xf32>
    %153 = arith.select %138, %152, %144 : vector<64x128xi1>, vector<64x128xf32>
    %154 = vector.extract_strided_slice %6 {offsets = [0, 15], sizes = [64, 1], strides = [1, 1]} : vector<64x16xf32> to vector<64x1xf32>
    %cst_29 = arith.constant 1.500000e+01 : f32
    %155 = vector.broadcast %cst_29 : f32 to vector<64x128xf32>
    %156 = arith.cmpf oeq, %18, %155 : vector<64x128xf32>
    %157 = vector.shape_cast %154 : vector<64x1xf32> to vector<64x1xf32>
    %158 = vector.broadcast %157 : vector<64x1xf32> to vector<64x128xf32>
    %159 = arith.select %156, %158, %150 : vector<64x128xi1>, vector<64x128xf32>
    %160 = vector.shape_cast %154 : vector<64x1xf32> to vector<64x1xf32>
    %161 = vector.broadcast %160 : vector<64x1xf32> to vector<64x128xf32>
    %162 = arith.select %147, %161, %153 : vector<64x128xi1>, vector<64x128xf32>
    %cst_30 = arith.constant 1.000000e+00 : f32
    %163 = vector.broadcast %cst_30 : f32 to vector<64x128xf32>
    %164 = arith.subf %163, %19 : vector<64x128xf32>
    %165 = arith.mulf %159, %164 : vector<64x128xf32>
    %166 = arith.addf %1, %165 : vector<64x128xf32>
    %167 = arith.mulf %162, %19 : vector<64x128xf32>
    %168 = arith.addf %166, %167 : vector<64x128xf32>
    %c0_31 = arith.constant 0 : index
    %c0_32 = arith.constant 0 : index
    %c0_33 = arith.constant 0 : index
    %c0_34 = arith.constant 0 : index
    %169 = vector.load %arg6[%c0_31, %c0_32, %c0_33, %c0_34] : memref<1x1x64x128xf32, #tpu.memory_space<vmem>>, vector<1x1x64x128xf32>
    %170 = vector.shape_cast %169 : vector<1x1x64x128xf32> to vector<64x128xf32>
    %171 = vector.shape_cast %168 : vector<64x128xf32> to vector<1x1x64x128xf32>
    tpu.vector_store %arg6[%c0_31, %c0_32, %c0_33, %c0_34], %171 {strides = array<i32>} : memref<1x1x64x128xf32, #tpu.memory_space<vmem>>, vector<1x1x64x128xf32>,
    return
  }
  func.func @transform_0(%arg0: i32, %arg1: i32, %arg2: i32) -> (i32, i32, i32, i32) {
    %c0_i32 = arith.constant 0 : i32
    %c0_i32_0 = arith.constant 0 : i32
    %c0_i32_1 = arith.constant 0 : i32
    return %arg0, %arg1, %c0_i32, %c0_i32_0 : i32, i32, i32, i32
  }
  func.func @transform_1(%arg0: i32, %arg1: i32, %arg2: i32) -> (i32, i32, i32, i32) {
    %c0_i32 = arith.constant 0 : i32
    %c0_i32_0 = arith.constant 0 : i32
    return %arg0, %arg1, %arg2, %c0_i32 : i32, i32, i32, i32
  }
  func.func @transform_2(%arg0: i32, %arg1: i32, %arg2: i32) -> (i32, i32) {
    %c0_i32 = arith.constant 0 : i32
    %c0_i32_0 = arith.constant 0 : i32
    %c0_i32_1 = arith.constant 0 : i32
    return %c0_i32, %c0_i32_0 : i32, i32
  }
  func.func @transform_3(%arg0: i32, %arg1: i32, %arg2: i32) -> (i32, i32, i32, i32) {
    %c0_i32 = arith.constant 0 : i32
    %c0_i32_0 = arith.constant 0 : i32
    return %arg0, %arg1, %arg2, %c0_i32 : i32, i32, i32, i32
  }
}

</mosaic_0001>

<bundles_post_ra>
// kernel: tpu_custom_call.1
= control target key start
LH: loop header
LB: loop body
LE: loop exit
PB: predicated region body
PF: predicated region fallthrough
CT: control target
= control target key end

     0   :  { %8 = vsyncpa [#allocation3], 0  ;;  %s5228_s0 = inlined_call_operand.vmem [shape: f32[2,4,256,16], index: 0, kind: input, shape index: {}]   ;;  %s5229_s1 = inlined_call_operand.vmem [shape: f32[2,4,256,128], index: 1, kind: input, shape index: {}]   ;;  %s5230_s2 = inlined_call_operand.vmem [shape: f32[128,128], index: 2, kind: input, shape index: {}]   ;;  %s5231_s3 = inlined_call_operand.hbm [shape: f32[2,4,256,128], index: 3, kind: output, shape index: {}]  }
   0x1   :  { %10 = vsyncpa [#allocation3 + $0x1], 0  ;;  %s3117_s12 = smov 0   ;;  %s3119_s13 = smov 0  }
   0x2   :  { %s3121_s14 = smov 0   ;;  %s3123_s15 = smov 0  }
   0x3   :  { %s3125_s16 = smov 0   ;;  %s3127_s17 = smov 0  }
   0x4   :  { %s3129_s18 = smov 0   ;;  %s3131_s19 = smov 0  }
   0x5   :  { %s3133_s20 = smov 0   ;;  %s3135_s21 = smov 0  }
   0x6 LB: > { %s2370_s22 = sadd.s32 4294967295, %s3076_s21   ;;  %s28_s23 = sadd.s32 1, %s3064_s18  ;;  %s3076_s21 = sphi %s3135_s21, %s16_s21   ;;  %s3072_s20 = sphi %s3133_s20, %s5459_s20   ;;  %s3068_s19 = sphi %s3131_s19, %s5458_s19   ;;  %s3064_s18 = sphi %s3129_s18, %s5457_s18   ;;  %s3060_s17 = sphi %s3127_s17, %s5456_s17   ;;  %s3056_s16 = sphi %s3125_s16, %s5455_s16   ;;  %s3052_s15 = sphi %s3123_s15, %s5454_s15   ;;  %s3048_s14 = sphi %s3121_s14, %s5453_s14   ;;  %s3044_s13 = sphi %s3119_s13, %s5452_s13   ;;  %s3040_s12 = sphi %s3117_s12, %s5451_s12  }
   0x7   : > { %p29_p0 = scmp.ge.s32.totalorder %s28_s23, 4  ;;  %s31_s24 = sadd.s32 1, %s3068_s19 }
   0x8   : > { %s2371_s25 = sadd.s32 4294967294, %s3076_s21   ;;  %p135_p1 = scmp.ne.s32.totalorder %s3048_s14, %s3044_s13 }
   0x9   : > { %s5461_s23 = smov (%p29_p0, %s28_s23), 0  ;;  %s5463_s24 = smov (!%p29_p0, %s31_s24), %s3068_s19 }
   0xa   : > { %s35_s26 = sadd.s32 1, %s3072_s20  ;;  %p136_p2 = scmp.eq.s32.totalorder %s2370_s22, 31 }
   0xb   : > { %p33_p3 = scmp.ge.s32.totalorder %s5463_s24, 4  ;;  %p141_p4 = scmp.ne.s32.totalorder %s3044_s13, %s3040_s12 }
   0xc   : > { %p3179_p5 = por %p136_p2, %p135_p1  ;;  %p142_p6 = scmp.eq.s32.totalorder %s2371_s25, 31 }
   0xd   : > { %s5465_s24 = smov (%p33_p3, %s5463_s24), 0  ;;  %s5467_s26 = smov (!%p33_p3, %s35_s26), %s3072_s20 }
   0xe   : > { %p3186_p7 = por %p142_p6, %p141_p4  ;;  %p37_p8 = scmp.ge.s32.totalorder %s5467_s26, 2 }
   0xf   : > { %p2374_p9 = scmp.ge.s32.totalorder %s3076_s21, 1  ;;  %s119_s29 = ssub.s32 %s3068_s19, %s5465_s24 }
  0x10   : > { %p192_p10 = scmp.lt.s32.totalorder %s3076_s21, 33  ;;  %s5469_s26 = smov (%p37_p8, %s5467_s26), 0 }
  0x11   : > { %s121_s30 = ssub.s32 %s3064_s18, %s5461_s23  ;;  %s118_s4 = ssub.s32 %s3072_s20, %s5469_s26 }
  0x12   : > { %p193_p11 = pnand %p2374_p9, %p192_p10  ;;  %s120_s5 = sor.u32 %s119_s29, %s118_s4 }
  0x13   : > { %s122_s6 = sor.u32 %s121_s30, %s120_s5  ;;  %s125_s7 = sadd.s32 1, %s3048_s14 }
  0x14   : > { %p123_p12 = scmp.eq.s32.totalorder %s122_s6, 0  ;;  %196 = sbr.rel (%p193_p11) target bundleno = 514 (0x202), region = 32 }
  0x16   : > { %s3202_s8 = scalar_select %p123_p12, %s3048_s14, %s125_s7  }
  0x19   : > { %v322_v0 = vld [vmem:[%s5230_s2 + $0x78] sm:$0xff]  ;;  %p233_p13 = scmp.lt.s32.totalorder %s3060_s17, 1  ;;  %p235_p0 = scmp.lt.s32.totalorder %s3056_s16, 3  ;;  %v321_v1 = vld [vmem:[%s5230_s2 + $0x70] sm:$0xff]  ;;  %v320_v2 = vld [vmem:[%s5230_s2 + $0x68] sm:$0xff]  ;;  %v3078_v3 = vmov 0  }
  0x1a   : > { %2905 = vset.pattern.permute.xlu1 %v3078_v3  ;;  %v3215_v4 = vand.u32 4294901760, %v322_v0  ;;  %v3217_v5 = vand.u32 4294901760, %v321_v1  ;;  %v3219_v6 = vand.u32 4294901760, %v320_v2  ;;  %v319_v7 = vld [vmem:[%s5230_s2 + $0x60] sm:$0xff]  ;;  %v318_v8 = vld [vmem:[%s5230_s2 + $0x58] sm:$0xff]  ;;  %2904 = vset.pattern.permute.xlu0 %v3078_v3  ;;  %v317_v11 = vld [vmem:[%s5230_s2 + $0x50] sm:$0xff] }
  0x1b   : > { %s3228_s7 = scalar_select %p233_p13, %s3060_s17, 1  ;;  %v3230_v9 = vand.u32 4294901760, %v319_v7  ;;  %v3232_v10 = vand.u32 4294901760, %v318_v8  ;;  %v316_v12 = vld [vmem:[%s5230_s2 + $0x48] sm:$0xff]  ;;  %v315_v13 = vld [vmem:[%s5230_s2 + $0x40] sm:$0xff]  ;;  %v3258_v17 = vand.u32 4294901760, %v317_v11 }
  0x1c   : > { %2535 = vmatprep.subr.mxu0 %v3215_v4  ;;  %s3247_s30 = scalar_select %p235_p0, %s3056_s16, 3  ;;  %v3250_v14 = vsub.f32 %v322_v0, %v3215_v4  ;;  %v3253_v15 = vsub.f32 %v321_v1, %v3217_v5  ;;  %v3256_v16 = vsub.f32 %v320_v2, %v3219_v6  ;;  %v3268_v20 = vand.u32 4294901760, %v316_v12  ;;  %v314_v22 = vld [vmem:[%s5230_s2 + $0x38] sm:$0xff]  ;;  %v313_v35 = vld [vmem:[%s5230_s2 + $0x30] sm:$0xff]  ;;  %v312_v40 = vld [vmem:[%s5230_s2 + $0x28] sm:$0xff] }
  0x1d   : > { %2536 = vmatpush3.msra.mxu0 %v3215_v4  ;;  %s5232_s4 = sshll.u32 %s3228_s7, 7  ;;  %v3263_v18 = vsub.f32 %v319_v7, %v3230_v9  ;;  %v3266_v19 = vsub.f32 %v318_v8, %v3232_v10  ;;  %v3270_v21 = vand.u32 4294901760, %v315_v13  ;;  %s2383_s10 = sshll.u32 %s3052_s15, 6  ;;  %v3288_v26 = vsub.f32 %v317_v11, %v3258_v17  ;;  %v311_v47 = vld [vmem:[%s5230_s2 + $0x20] sm:$0xff]  ;;  %v310_v55 = vld [vmem:[%s5230_s2 + $0x18] sm:$0xff]  ;;  %v309_v62 = vld [vmem:[%s5230_s2 + $0x10] sm:$0xff] }
  0x1e   : > { %s2376_s9 = sshll.u32 %s3247_s30, 5  ;;  %2537 = vmatprep.subr.mxu0 %v3217_v5  ;;  %v3279_v23 = vand.u32 4294901760, %v3250_v14  ;;  %v3282_v24 = vand.u32 4294901760, %v3253_v15  ;;  %v3285_v25 = vand.u32 4294901760, %v3256_v16  ;;  %v3302_v29 = vsub.f32 %v316_v12, %v3268_v20  ;;  %s3305_s22 = sshll.u32 %s3052_s15, 3 }
  0x1f   : > { %s239_s11 = sadd.s32 %s5232_s4, %s2376_s9  ;;  %2538 = vmatpush3.msra.mxu0 %v3217_v5  ;;  %v3296_v27 = vand.u32 4294901760, %v3263_v18  ;;  %v3299_v28 = vand.u32 4294901760, %v3266_v19  ;;  %v3314_v33 = vand.u32 4294901760, %v314_v22  ;;  %v3321_v34 = vsub.f32 %v315_v13, %v3270_v21  ;;  %p247_p1 = scmp.lt.s32.totalorder %s3305_s22, 31  ;;  %v308_v13 = vld [vmem:[%s5230_s2 + $0x8] sm:$0xff] }
  0x20   : > { %s2378_s25 = sshll.u32 %s239_s11, 3  ;;  %v488_v30 = vsub.f32 %v3250_v14, %v3279_v23  ;;  %2539 = vmatprep.subr.mxu0 %v3219_v6  ;;  %v495_v31 = vsub.f32 %v3253_v15, %v3282_v24  ;;  %v502_v32 = vsub.f32 %v3256_v16, %v3285_v25  ;;  %v3333_v39 = vand.u32 4294901760, %v3288_v26  ;;  %s5310_s29 = sshll.u32 %s3228_s7, 7 }
  0x21   : > { %s241_s15 = scalar_lea.vmem %s5228_s0, %s2378_s25  ;;  %2540 = vmatpush3.msra.mxu0 %v3219_v6  ;;  %v509_v38 = vsub.f32 %v3263_v18, %v3296_v27  ;;  %v516_v42 = vsub.f32 %v3266_v19, %v3299_v28  ;;  %v3346_v44 = vand.u32 4294901760, %v3302_v29  ;;  %v3348_v45 = vand.u32 4294901760, %v313_v35  ;;  %s2387_s7 = sshll.u32 %s3060_s17, 7 }
  0x22   : > { %s3327_s4 = scalar_lea.vmem %s241_s15, %s2383_s10  ;;  %v489_v36 = vand.u32 4294901760, %v488_v30  ;;  %v496_v37 = vand.u32 4294901760, %v495_v31  ;;  %2541 = vmatprep.subr.mxu0 %v3230_v9  ;;  %v503_v43 = vand.u32 4294901760, %v502_v32  ;;  %v3351_v46 = vsub.f32 %v314_v22, %v3314_v33 }
  0x23   : > { %v3339_v41 = vld [vmem:[%s3327_s4 + $0x10] sm:$0xff]  ;;  %2542 = vmatpush3.msra.mxu0 %v3230_v9  ;;  %v3357_v48 = vld [vmem:[%s3327_s4 + $0x18] sm:$0xff]  ;;  %v3361_v49 = vand.u32 4294901760, %v3321_v34  ;;  %v3363_v50 = vand.u32 4294901760, %v312_v40  ;;  %s248_s15 = scalar_select %p247_p1, %s3305_s22, 31  ;;  %v510_v51 = vand.u32 4294901760, %v509_v38  ;;  %v523_v52 = vsub.f32 %v3288_v26, %v3333_v39 }
  0x24   : > { %1309 = vperm.xlu1 %2905, %v3339_v41   ;;  %2579 = vmatprep.subr.mxu1 %v489_v36  ;;  %v3372_v53 = vsub.f32 %v313_v35, %v3348_v45  ;;  %v3375_v54 = vand.u32 4294901760, %v311_v47  ;;  %v517_v56 = vand.u32 4294901760, %v516_v42  ;;  %v530_v57 = vsub.f32 %v3302_v29, %v3346_v44  ;;  %v3391_v59 = vld [vmem:[%s3327_s4 + $0x28] sm:$0xff]  ;;  %v3428_v30 = vld [vmem:[%s3327_s4 + $0x38] sm:$0xff] }
  0x25   : > { %2580 = vmatpush3.msra.mxu1 %v489_v36  ;;  %2543 = vmatprep.subr.mxu0 %v3232_v10  ;;  %s250_s25 = sadd.s32 %s2376_s9, %s248_s15  ;;  %v3386_v58 = vand.u32 4294901760, %v3351_v46  ;;  %v537_v60 = vsub.f32 %v3321_v34, %v3361_v49  ;;  %v3397_v61 = vsub.f32 %v312_v40, %v3363_v50  ;;  %v524_v63 = vand.u32 4294901760, %v523_v52 }
  0x26   : > { %2581 = vmatprep.subr.mxu1 %v496_v37  ;;  %2544 = vmatpush3.msra.mxu0 %v3232_v10  ;;  %s252_s10 = sadd.s32 %s5310_s29, %s250_s25  ;;  %v3404_v0 = vand.u32 4294901760, %v3372_v53  ;;  %v3406_v1 = vand.u32 4294901760, %v310_v55  ;;  %v3415_v2 = vsub.f32 %v311_v47, %v3375_v54  ;;  %v531_v8 = vand.u32 4294901760, %v530_v57 }
  0x27   : > { %2582 = vmatpush3.msra.mxu1 %v496_v37  ;;  %2545 = vmatprep.subr.mxu0 %v3258_v17  ;;  %s2382_s5 = sshll.u32 %s252_s10, 3  ;;  %v544_v11 = vsub.f32 %v3351_v46, %v3386_v58  ;;  %v3422_v12 = vand.u32 4294901760, %v309_v62  ;;  %v538_v31 = vand.u32 4294901760, %v537_v60  ;;  %v3432_v32 = vand.u32 4294901760, %v3397_v61  ;;  %v307_v37 = vld [vmem:[%s5230_s2] sm:$0xff]  ;;  %v3462_v60 = vld [vmem:[%s3327_s4 + $0x8] sm:$0xff] }
  0x28   : > { %1314 = vperm.xlu1 %2905, %v3357_v48   ;;  %2583 = vmatprep.subr.mxu1 %v503_v43  ;;  %5311 = vst [vmem:[#allocation5_spill] sm:$0xff] %v3404_v0  ;;  %s3411_s6 = scalar_lea.vmem %s5229_s1, %s2382_s5  ;;  %v551_v35 = vsub.f32 %v3372_v53, %v3404_v0  ;;  %v3438_v36 = vsub.f32 %v310_v55, %v3406_v1  ;;  %v3446_v42 = vand.u32 4294901760, %v3415_v2  ;;  %s2386_s5 = sshll.u32 %s3056_s16, 5 }
  0x29   : > { %2584 = vmatpush3.msra.mxu1 %v503_v43  ;;  %2546 = vmatpush3.msra.mxu0 %v3258_v17  ;;  %v257_v3 = vld [vmem:[%s3411_s6] sm:$0xff]  ;;  %v258_v7 = vld [vmem:[%s3411_s6 + $0x8] sm:$0xff]  ;;  %5312 = vst [vmem:[#allocation6_spill] sm:$0xff] %v3432_v32  ;;  %v259_v40 = vld [vmem:[%s3411_s6 + $0x10] sm:$0xff]  ;;  %v3448_v43 = vand.u32 4294901760, %v308_v13  ;;  %v3453_v52 = vsub.f32 %v309_v62, %v3422_v12  ;;  %v558_v55 = vsub.f32 %v3397_v61, %v3432_v32  ;;  %s2246_s16 = sadd.s32 %s2386_s5, %s3305_s22  ;;  %s3094_s5 = smov [#allocation2]  }
  0x2a   : > { %2585 = vmatprep.subr.mxu1 %v510_v51  ;;  %2547 = vmatprep.subr.mxu0 %v3268_v20  ;;  %v275_v22 = vmul.f32 0.5, %v257_v3  ;;  %v276_v38 = vmul.f32 0.5, %v258_v7  ;;  %5313 = vst [vmem:[#allocation7_spill] sm:$0xff] %v3446_v42  ;;  %v260_v47 = vld [vmem:[%s3411_s6 + $0x18] sm:$0xff]  ;;  %v277_v57 = vmul.f32 0.5, %v259_v40  ;;  %v3465_v62 = vand.u32 4294901760, %v3438_v36  ;;  %s2248_s17 = sadd.s32 %s2387_s7, %s2246_s16 }
  0x2b   : > { %2586 = vmatpush3.msra.mxu1 %v510_v51  ;;  %2548 = vmatpush3.msra.mxu0 %v3268_v20  ;;  %v545_v51 = vand.u32 4294901760, %v544_v11  ;;  %v278_v3 = vmul.f32 0.5, %v260_v47  ;;  %v565_v7 = vsub.f32 %v3415_v2, %v3446_v42  ;;  %v5233_v11 = vmov 1   ;;  %v263_v32 = vld [vmem:[%s3411_s6 + $0x30] sm:$0xff]  ;;  %s2388_s22 = sshll.u32 %s2248_s17, 7 }
  0x2c   : > { %1324 = vperm.xlu1 %2905, %v3391_v59   ;;  %2587 = vmatprep.subr.mxu1 %v517_v56  ;;  %2936 = vtanh.f32 %v275_v22  ;;  %5314 = vst [vmem:[#allocation8_spill] sm:$0xff] %v3465_v62  ;;  %v3475_v22 = vand.u32 4294901760, %v3453_v52  ;;  %v572_v40 = vsub.f32 %v3438_v36, %v3465_v62  ;;  %v3504_v62 = vld [vmem:[%s3327_s4 + $0x20] sm:$0xff]  ;;  %s5161_s29 = scalar_lea.hbm %s5231_s3, %s2388_s22 }
  0x2d   : > { %2588 = vmatpush3.msra.mxu1 %v517_v56  ;;  %2549 = vmatprep.subr.mxu0 %v3270_v21  ;;  %2938 = vtanh.f32 %v276_v38  ;;  %v3458_v56 = vand.u32 4294901760, %v307_v37  ;;  %v566_v47 = vand.u32 4294901760, %v565_v7 }
  0x2e   : > { %2589 = vmatprep.subr.mxu1 %v524_v63  ;;  %2550 = vmatpush3.msra.mxu0 %v3270_v21  ;;  %5315 = vst [vmem:[#allocation9_spill] sm:$0xff] %v3475_v22  ;;  %2940 = vtanh.f32 %v277_v57 }
  0x2f   : > { %2590 = vmatpush3.msra.mxu1 %v524_v63  ;;  %2551 = vmatprep.subr.mxu0 %v3314_v33  ;;  %v552_v63 = vand.u32 4294901760, %v551_v35  ;;  %v559_v35 = vand.u32 4294901760, %v558_v55  ;;  %v3482_v38 = vsub.f32 %v307_v37, %v3458_v56  ;;  %2942 = vtanh.f32 %v278_v3  ;;  %v262_v55 = vld [vmem:[%s3411_s6 + $0x28] sm:$0xff] }
  0x30   : > { %1334 = vperm.xlu1 %2905, %v3428_v30   ;;  %2591 = vmatprep.subr.mxu1 %v531_v8  ;;  %v579_v37 = vsub.f32 %v3453_v52, %v3475_v22  ;;  %v573_v3 = vand.u32 4294901760, %v572_v40  ;;  %v280_v7 = vmul.f32 0.5, %v262_v55 }
  0x31   : > { %2592 = vmatpush3.msra.mxu1 %v531_v8  ;;  %2552 = vmatpush3.msra.mxu0 %v3314_v33  ;;  %v3471_v8 = vsub.f32 %v308_v13, %v3448_v43  ;;  %v261_v13 = vld [vmem:[%s3411_s6 + $0x20] sm:$0xff] }
  0x32   : > { %2593 = vmatprep.subr.mxu1 %v538_v31  ;;  %2553 = vmatprep.subr.mxu0 %v3348_v45  ;;  %v279_v57 = vmul.f32 0.5, %v261_v13  ;;  %v580_v22 = vand.u32 4294901760, %v579_v37  ;;  %v281_v37 = vmul.f32 0.5, %v263_v32 }
  0x33   : > { %2594 = vmatpush3.msra.mxu1 %v538_v31  ;;  %2554 = vmatpush3.msra.mxu0 %v3348_v45  ;;  %v3479_v31 = vld [vmem:[%s3327_s4] sm:$0xff] }
  0x34   : > { %2907 = vset.pattern.permute.xlu1 %v5233_v11  ;;  %2595 = vmatprep.subr.mxu1 %v545_v51  ;;  %2944 = vtanh.f32 %v279_v57  ;;  %v3519_v57 = vld [vmem:[%s3327_s4 + $0x30] sm:$0xff] }
  0x35   : > { %1358 = vperm.xlu1 %2907, %v3462_v60   ;;  %2596 = vmatpush3.msra.mxu1 %v545_v51  ;;  %v3490_v51 = vand.u32 4294901760, %v3471_v8  ;;  %2946 = vtanh.f32 %v280_v7 }
  0x36   : > { %2555 = vmatprep.subr.mxu0 %v3363_v50  ;;  %2597 = vmatprep.subr.mxu1 %v552_v63  ;;  %2948 = vtanh.f32 %v281_v37 }
  0x37   : > { %2556 = vmatpush3.msra.mxu0 %v3363_v50  ;;  %2598 = vmatpush3.msra.mxu1 %v552_v63  ;;  %5316 = vst [vmem:[#allocation10_spill] sm:$0xff] %v3490_v51  ;;  %v3499_v63 = vand.u32 4294901760, %v3482_v38  ;;  %v586_v13 = vsub.f32 %v3471_v8, %v3490_v51 }
  0x38   : > { %1299 = vperm.xlu0 %2904, %v3479_v31   ;;  %2557 = vmatprep.subr.mxu0 %v3375_v54 }
  0x39   : > { %2599 = vmatprep.subr.mxu1 %v559_v35  ;;  %1362 = vperm.xlu1 %2907, %v3339_v41   ;;  %5317 = vst [vmem:[#allocation11_spill] sm:$0xff] %v3499_v63  ;;  %v2937_v11 = vpop.eup %2936  ;;  %v593_v40 = vsub.f32 %v3482_v38, %v3499_v63 }
  0x3a   : > { %2558 = vmatpush3.msra.mxu0 %v3375_v54  ;;  %2600 = vmatpush3.msra.mxu1 %v559_v35  ;;  %v291_v42 = vmul.f32 0.5, %v2937_v11  ;;  %v2939_v35 = vpop.eup %2938  ;;  %v587_v11 = vand.u32 4294901760, %v586_v13 }
  0x3b   : > { %2559 = vmatprep.subr.mxu0 %v3406_v1  ;;  %2601 = vmatprep.subr.mxu1 %v566_v47  ;;  %v292_v51 = vmul.f32 0.5, %v2939_v35  ;;  %v2941_v7 = vpop.eup %2940 }
  0x3c   : > { %2560 = vmatpush3.msra.mxu0 %v3406_v1  ;;  %2602 = vmatpush3.msra.mxu1 %v566_v47  ;;  %v299_v55 = vadd.f32 0.5, %v291_v42  ;;  %v264_v47 = vld [vmem:[%s3411_s6 + $0x38] sm:$0xff]  ;;  %v594_v42 = vand.u32 4294901760, %v593_v40  ;;  %v2943_v13 = vpop.eup %2942  ;;  %v293_v40 = vmul.f32 0.5, %v2941_v7 }
  0x3d   : > { %1304 = vperm.xlu0 %2904, %v3462_v60   ;;  %2561 = vmatprep.subr.mxu0 %v3422_v12  ;;  %v300_v63 = vadd.f32 0.5, %v292_v51  ;;  %v282_v35 = vmul.f32 0.5, %v264_v47 }
  0x3e   : > { %2603 = vmatprep.subr.mxu1 %v573_v3  ;;  %1370 = vperm.xlu1 %2907, %v3504_v62   ;;  %v3521_v0 = vand.u32 4294901760, %v299_v55 }
  0x3f   : > { %2562 = vmatpush3.msra.mxu0 %v3422_v12  ;;  %2604 = vmatpush3.msra.mxu1 %v573_v3  ;;  %v3529_v3 = vand.u32 4294901760, %v300_v63  ;;  %2950 = vtanh.f32 %v282_v35  ;;  %v5250_v35 = vmov 2  }
  0x40   : > { %2563 = vmatprep.subr.mxu0 %v3448_v43  ;;  %2605 = vmatprep.subr.mxu1 %v580_v22  ;;  %v3527_v32 = vsub.f32 %v299_v55, %v3521_v0 }
  0x41   : > { %2564 = vmatpush3.msra.mxu0 %v3448_v43  ;;  %2606 = vmatpush3.msra.mxu1 %v580_v22  ;;  %5318 = vst [vmem:[#allocation12_spill] sm:$0xff] %v3529_v3  ;;  %v3535_v51 = vsub.f32 %v300_v63, %v3529_v3  ;;  %v2945_v7 = vpop.eup %2944 }
  0x42   : > { %1319 = vperm.xlu0 %2904, %v3504_v62   ;;  %2565 = vmatprep.subr.mxu0 %v3458_v56  ;;  %v5248_v22 = vand.u32 4294901760, %v3527_v32 }
  0x43   : > { %2607 = vmatprep.subr.mxu1 %v587_v11  ;;  %1378 = vperm.xlu1 %2907, %v3519_v57   ;;  %v5249_v47 = vand.u32 4294901760, %v3535_v51 }
  0x44   : > { %2566 = vmatpush3.msra.mxu0 %v3458_v56  ;;  %2608 = vmatpush3.msra.mxu1 %v587_v11  ;;  %v407_v55 = vsub.f32 %v3527_v32, %v5248_v22  ;;  %v294_v11 = vmul.f32 0.5, %v2943_v13  ;;  %v2947_v22 = vpop.eup %2946 }
  0x45   : > { %2609 = vmatprep.subr.mxu1 %v594_v42  ;;  %2623 = vmatprep.subr.mxu0 %v3250_v14  ;;  %v417_v37 = vsub.f32 %v3535_v51, %v5249_v47  ;;  %v5319_v47 = vmov 1  }
  0x46   : > { %2610 = vmatpush3.msra.mxu1 %v594_v42  ;;  %1329 = vperm.xlu0 %2904, %v3519_v57   ;;  %v408_v63 = vand.u32 4294901760, %v407_v55  ;;  %v301_v42 = vadd.f32 0.5, %v293_v40  ;;  %v302_v55 = vadd.f32 0.5, %v294_v11  ;;  %v296_v11 = vmul.f32 0.5, %v2947_v22 }
  0x47   : > { %2611 = vmatprep.mubr.f32.mxu1 %v3521_v0  ;;  %2667 = vmatprep.subr.mxu1 %v3215_v4  ;;  %v418_v13 = vand.u32 4294901760, %v417_v37 }
  0x48   : > { %2908 = vset.pattern.permute.xlu1 %v5250_v35  ;;  %2612 = vmatmul.mubr.f32.vlgmr.msra.gmra.mxu1 %v3529_v3  ;;  %v295_v35 = vmul.f32 0.5, %v2945_v7  ;;  %v3558_v3 = vand.u32 4294901760, %v301_v42  ;;  %v3562_v40 = vand.u32 4294901760, %v302_v55  ;;  %v304_v22 = vadd.f32 0.5, %v296_v11 }
  0x49   : > { %2668 = vmatpush3.msra.mxu1 %v3215_v4  ;;  %1410 = vperm.xlu1 %2908, %v3479_v31  }
  0x4a   : > { %2567 = vmatprep.mubr.f32.mxu0 %v408_v63  ;;  %2669 = vmatprep.subr.mxu1 %v3217_v5  ;;  %v3571_v63 = vsub.f32 %v301_v42, %v3558_v3 }
  0x4b   : > { %2670 = vmatpush3.msra.mxu1 %v3217_v5  ;;  %2906 = vset.pattern.permute.xlu0 %v5319_v47  ;;  %v2949_v47 = vpop.eup %2948 }
  0x4c   : > { %2568 = vmatmul.mubr.f32.vlgmr.msra.gmra.mxu0 %v418_v13  ;;  %2671 = vmatprep.subr.mxu1 %v3219_v6  ;;  %v2951_v37 = vpop.eup %2950  ;;  %v426_v7 = vand.u32 4294901760, %v3571_v63  ;;  %v3590_v13 = vand.u32 4294901760, %v304_v22 }
  0x4d   : > { %2624 = vmatpush3.msra.mxu0 %v3250_v14  ;;  %1354 = vperm.xlu0 %2906, %v3479_v31   ;;  %v303_v14 = vadd.f32 0.5, %v295_v35  ;;  %v297_v35 = vmul.f32 0.5, %v2949_v47  ;;  %v298_v42 = vmul.f32 0.5, %v2951_v37 }
  0x4e   : > { %2625 = vmatprep.subr.mxu0 %v3253_v15  ;;  %2672 = vmatpush3.msra.mxu1 %v3219_v6  ;;  %v427_v11 = vsub.f32 %v3571_v63, %v426_v7 }
  0x4f   : > { %2626 = vmatpush3.msra.mxu0 %v3253_v15  ;;  %1418 = vperm.xlu1 %2908, %v3339_v41   ;;  %v3576_v15 = vsub.f32 %v302_v55, %v3562_v40  ;;  %v305_v55 = vadd.f32 0.5, %v297_v35  ;;  %v306_v47 = vadd.f32 0.5, %v298_v42 }
  0x50   : > { %2627 = vmatprep.subr.mxu0 %v3256_v16  ;;  %2673 = vmatprep.subr.mxu1 %v3230_v9  ;;  %v428_v35 = vand.u32 4294901760, %v427_v11 }
  0x51   : > { %2628 = vmatpush3.msra.mxu0 %v3256_v16  ;;  %2674 = vmatpush3.msra.mxu1 %v3230_v9  ;;  %v3582_v16 = vand.u32 4294901760, %v303_v14  ;;  %v3621_v42 = vand.u32 4294901760, %v306_v47 }
  0x52   : > { %2629 = vmatprep.subr.mxu0 %v3263_v18  ;;  %2675 = vmatprep.subr.mxu1 %v3232_v10 }
  0x53   : > { %2630 = vmatpush3.msra.mxu0 %v3263_v18  ;;  %1366 = vperm.xlu0 %2906, %v3357_v48   ;;  %v5253_v18 = vand.u32 4294901760, %v3576_v15  ;;  %v3638_v11 = vsub.f32 %v306_v47, %v3621_v42  ;;  %v5320_v47 = vmov 2  }
  0x54   : > { %2631 = vmatprep.subr.mxu0 %v3266_v19  ;;  %2676 = vmatpush3.msra.mxu1 %v3232_v10 }
  0x55   : > { %2632 = vmatpush3.msra.mxu0 %v3266_v19  ;;  %1422 = vperm.xlu1 %2908, %v3357_v48   ;;  %v3597_v19 = vsub.f32 %v303_v14, %v3582_v16  ;;  %v3610_v14 = vsub.f32 %v304_v22, %v3590_v13 }
  0x56   : > { %2633 = vmatprep.subr.mxu0 %v3288_v26  ;;  %2677 = vmatprep.subr.mxu1 %v3258_v17 }
  0x57   : > { %2634 = vmatpush3.msra.mxu0 %v3288_v26  ;;  %2678 = vmatpush3.msra.mxu1 %v3258_v17  ;;  %v437_v26 = vsub.f32 %v3576_v15, %v5253_v18  ;;  %v446_v37 = vand.u32 4294901760, %v3597_v19  ;;  %v5254_v22 = vand.u32 4294901760, %v3610_v14 }
  0x58   : > { %2635 = vmatprep.subr.mxu0 %v3302_v29  ;;  %2679 = vmatprep.subr.mxu1 %v3268_v20 }
  0x59   : > { %2636 = vmatpush3.msra.mxu0 %v3302_v29  ;;  %1374 = vperm.xlu0 %2906, %v3391_v59   ;;  %v3614_v29 = vand.u32 4294901760, %v305_v55 }
  0x5a   : > { %2637 = vmatprep.subr.mxu0 %v3321_v34  ;;  %2680 = vmatpush3.msra.mxu1 %v3268_v20 }
  0x5b   : > { %2638 = vmatpush3.msra.mxu0 %v3321_v34  ;;  %1430 = vperm.xlu1 %2908, %v3391_v59   ;;  %v438_v34 = vand.u32 4294901760, %v437_v26  ;;  %v3629_v18 = vsub.f32 %v305_v55, %v3614_v29 }
  0x5c   : > { %2639 = vmatprep.subr.mxu0 %v3351_v46  ;;  %2681 = vmatprep.subr.mxu1 %v3270_v21 }
  0x5d   : > { %2640 = vmatpush3.msra.mxu0 %v3351_v46  ;;  %2682 = vmatpush3.msra.mxu1 %v3270_v21  ;;  %v447_v46 = vsub.f32 %v3597_v19, %v446_v37  ;;  %v466_v55 = vand.u32 4294901760, %v3629_v18 }
  0x5e   : > { %2641 = vmatprep.subr.mxu0 %v3372_v53  ;;  %2683 = vmatprep.subr.mxu1 %v3314_v33 }
  0x5f   : > { %1382 = vperm.xlu0 %2906, %v3428_v30   ;;  %2642 = vmatpush3.msra.mxu0 %v3372_v53  ;;  %v457_v53 = vsub.f32 %v3610_v14, %v5254_v22  ;;  %v448_v26 = vand.u32 4294901760, %v447_v46  ;;  %v467_v22 = vsub.f32 %v3629_v18, %v466_v55 }
  0x60   : > { %2684 = vmatpush3.msra.mxu1 %v3314_v33  ;;  %1438 = vperm.xlu1 %2908, %v3428_v30  }
  0x61   : > { %2570 = vmatprep.mubr.f32.mxu0 %v428_v35  ;;  %2643 = vmatprep.subr.mxu0 %v3397_v61  ;;  %v476_v35 = vand.u32 4294901760, %v3638_v11  ;;  %v468_v46 = vand.u32 4294901760, %v467_v22 }
  0x62   : > { %2685 = vmatprep.subr.mxu1 %v3348_v45  ;;  %2571 = vmatmul.mubr.f32.gmra.mxu0 %v438_v34  ;;  %v3081_v34 = vmov 3  }
  0x63   : > { %2644 = vmatpush3.msra.mxu0 %v3397_v61  ;;  %2686 = vmatpush3.msra.mxu1 %v3348_v45  ;;  %v458_v61 = vand.u32 4294901760, %v457_v53 }
  0x64   : > { %2614 = vmatprep.mubr.f32.mxu1 %v3558_v3  ;;  %2645 = vmatprep.subr.mxu0 %v3415_v2 }
  0x65   : > { %2687 = vmatprep.subr.mxu1 %v3363_v50  ;;  %2909 = vset.pattern.permute.xlu0 %v5320_v47  ;;  %v3089_v47 = vmov 11  }
  0x66   : > { %2615 = vmatmul.mubr.f32.gmra.mxu1 %v3562_v40  ;;  %2646 = vmatpush3.msra.mxu0 %v3415_v2  ;;  %v477_v2 = vsub.f32 %v3638_v11, %v476_v35 }
  0x67   : > { %2688 = vmatpush3.msra.mxu1 %v3363_v50  ;;  %2911 = vset.pattern.permute.xlu1 %v3081_v34 }
  0x68   : > { %1414 = vperm.xlu0 %2909, %v3462_v60   ;;  %2573 = vmatprep.mubr.f32.mxu0 %v448_v26  ;;  %v478_v53 = vand.u32 4294901760, %v477_v2 }
  0x69   : > { %2647 = vmatprep.subr.mxu0 %v3438_v36  ;;  %2689 = vmatprep.subr.mxu1 %v3375_v54 }
  0x6a   : > { %1470 = vperm.xlu1 %2911, %v3462_v60   ;;  %2574 = vmatmul.mubr.f32.gmra.mxu0 %v458_v61 }
  0x6b   : > { %2648 = vmatpush3.msra.mxu0 %v3438_v36  ;;  %2690 = vmatpush3.msra.mxu1 %v3375_v54  ;;  %v5321_v36 = vand.u32 4294901760, %v3527_v32 }
  0x6c   : > { %2617 = vmatprep.mubr.f32.mxu1 %v3582_v16  ;;  %2649 = vmatprep.subr.mxu0 %v3453_v52 }
  0x6d   : > { %2691 = vmatprep.subr.mxu1 %v3406_v1  ;;  %2618 = vmatmul.mubr.f32.gmra.mxu1 %v3590_v13 }
  0x6e   : > { %2650 = vmatpush3.msra.mxu0 %v3453_v52  ;;  %2692 = vmatpush3.msra.mxu1 %v3406_v1  ;;  %v5322_v52 = vand.u32 4294901760, %v3535_v51 }
  0x6f   : > { %1426 = vperm.xlu0 %2909, %v3504_v62   ;;  %2576 = vmatprep.mubr.f32.mxu0 %v468_v46 }
  0x70   : > { %2651 = vmatprep.subr.mxu0 %v3471_v8  ;;  %2693 = vmatprep.subr.mxu1 %v3422_v12 }
  0x71   : > { %1474 = vperm.xlu1 %2911, %v3339_v41   ;;  %2577 = vmatmul.mubr.f32.gmra.mxu0 %v478_v53  ;;  %v3932_v53 = vld [vmem:[%s3327_s4 + $0x28] sm:$0xff] }
  0x72   : > { %2652 = vmatpush3.msra.mxu0 %v3471_v8  ;;  %2694 = vmatpush3.msra.mxu1 %v3422_v12 }
  0x73   : > { %2620 = vmatprep.mubr.f32.mxu1 %v3614_v29  ;;  %2653 = vmatprep.subr.mxu0 %v3482_v38 }
  0x74   : > { %2695 = vmatprep.subr.mxu1 %v3448_v43  ;;  %2621 = vmatmul.mubr.f32.gmra.mxu1 %v3621_v42 }
  0x75   : > { %2654 = vmatpush3.msra.mxu0 %v3482_v38  ;;  %2696 = vmatpush3.msra.mxu1 %v3448_v43 }
  0x76   : > { %1434 = vperm.xlu0 %2909, %v3519_v57   ;;  %2655 = vmatprep.mubr.f32.mxu0 %v3527_v32 }
  0x77   : > { %2697 = vmatprep.subr.mxu1 %v3458_v56  ;;  %2711 = vmatprep.subr.mxu0 %v3279_v23 }
  0x78   : > { %1482 = vperm.xlu1 %2911, %v3504_v62   ;;  %2656 = vmatmul.mubr.f32.vlgmr.msra.gmra.mxu0 %v3535_v51 }
  0x79   : > { %2698 = vmatpush3.msra.mxu1 %v3458_v56  ;;  %2712 = vmatpush3.msra.mxu0 %v3279_v23 }
  0x7a   : > { %2699 = vmatprep.mubr.f32.mxu1 %v5321_v36  ;;  %2713 = vmatprep.subr.mxu0 %v3282_v24 }
  0x7b   : > { %2755 = vmatprep.subr.mxu1 %v3215_v4  ;;  %2700 = vmatmul.mubr.f32.vlgmr.msra.gmra.mxu1 %v5322_v52 }
  0x7c   : > { %2714 = vmatpush3.msra.mxu0 %v3282_v24  ;;  %2756 = vmatpush3.msra.mxu1 %v3215_v4  ;;  %v3082_v4 = vmov 4   ;;  %v5330_v24 = vld [vmem:[#allocation10_spill] sm:$0xff] }
  0x7d   : > { %2910 = vset.pattern.permute.xlu0 %v3081_v34  ;;  %2715 = vmatprep.subr.mxu0 %v3285_v25  ;;  %v3922_v34 = vld [vmem:[%s3327_s4 + $0x18] sm:$0xff] }
  0x7e   : > { %2757 = vmatprep.subr.mxu1 %v3217_v5  ;;  %1490 = vperm.xlu1 %2911, %v3519_v57  }
  0x7f   : > { %1466 = vperm.xlu0 %2910, %v3479_v31   ;;  %2716 = vmatpush3.msra.mxu0 %v3285_v25 }
  0x80   : > { %2758 = vmatpush3.msra.mxu1 %v3217_v5  ;;  %2717 = vmatprep.subr.mxu0 %v3296_v27  ;;  %v5323_v5 = vld [vmem:[#allocation5_spill] sm:$0xff] }
  0x81   : > { %2759 = vmatprep.subr.mxu1 %v3219_v6  ;;  %2718 = vmatpush3.msra.mxu0 %v3296_v27  ;;  %v3083_v27 = vmov 5  }
  0x82   : > { %2760 = vmatpush3.msra.mxu1 %v3219_v6  ;;  %2719 = vmatprep.subr.mxu0 %v3299_v28  ;;  %v5324_v6 = vld [vmem:[#allocation6_spill] sm:$0xff] }
  0x83   : > { %2761 = vmatprep.subr.mxu1 %v3230_v9  ;;  %2912 = vset.pattern.permute.xlu1 %v3082_v4 }
  0x84   : > { %1478 = vperm.xlu0 %2910, %v3357_v48   ;;  %2720 = vmatpush3.msra.mxu0 %v3299_v28  ;;  %v5332_v28 = vld [vmem:[#allocation11_spill] sm:$0xff] }
  0x85   : > { %2762 = vmatpush3.msra.mxu1 %v3230_v9  ;;  %1522 = vperm.xlu1 %2912, %v3479_v31   ;;  %v5325_v9 = vand.u32 4294901760, %v3576_v15 }
  0x86   : > { %2721 = vmatprep.subr.mxu0 %v3333_v39  ;;  %2763 = vmatprep.subr.mxu1 %v3232_v10 }
  0x87   : > { %2722 = vmatpush3.msra.mxu0 %v3333_v39  ;;  %2764 = vmatpush3.msra.mxu1 %v3232_v10  ;;  %v5326_v10 = vld [vmem:[#allocation7_spill] sm:$0xff] }
  0x88   : > { %2723 = vmatprep.subr.mxu0 %v3346_v44  ;;  %2765 = vmatprep.subr.mxu1 %v3258_v17 }
  0x89   : > { %1486 = vperm.xlu0 %2910, %v3391_v59   ;;  %2724 = vmatpush3.msra.mxu0 %v3346_v44 }
  0x8a   : > { %2766 = vmatpush3.msra.mxu1 %v3258_v17  ;;  %1530 = vperm.xlu1 %2912, %v3339_v41   ;;  %v5327_v17 = vld [vmem:[#allocation8_spill] sm:$0xff] }
  0x8b   : > { %2725 = vmatprep.subr.mxu0 %v3361_v49  ;;  %2767 = vmatprep.subr.mxu1 %v3268_v20 }
  0x8c   : > { %2726 = vmatpush3.msra.mxu0 %v3361_v49  ;;  %2768 = vmatpush3.msra.mxu1 %v3268_v20  ;;  %v5328_v20 = vand.u32 4294901760, %v3610_v14  ;;  %v3084_v49 = vmov 6  }
  0x8d   : > { %2727 = vmatprep.subr.mxu0 %v3386_v58  ;;  %2769 = vmatprep.subr.mxu1 %v3270_v21 }
  0x8e   : > { %1494 = vperm.xlu0 %2910, %v3428_v30   ;;  %2728 = vmatpush3.msra.mxu0 %v3386_v58 }
  0x8f   : > { %2770 = vmatpush3.msra.mxu1 %v3270_v21  ;;  %1534 = vperm.xlu1 %2912, %v3357_v48   ;;  %v5329_v21 = vld [vmem:[#allocation9_spill] sm:$0xff] }
  0x90   : > { %2729 = vmatprep.subr.mxu0 %v5323_v5  ;;  %2771 = vmatprep.subr.mxu1 %v3314_v33 }
  0x91   : > { %2658 = vmatprep.mubr.f32.mxu0 %v3571_v63  ;;  %2730 = vmatpush3.msra.mxu0 %v5323_v5 }
  0x92   : > { %2772 = vmatpush3.msra.mxu1 %v3314_v33  ;;  %2659 = vmatmul.mubr.f32.gmra.mxu0 %v3576_v15  ;;  %v5333_v33 = vld [vmem:[#allocation12_spill] sm:$0xff] }
  0x93   : > { %2731 = vmatprep.subr.mxu0 %v5324_v6  ;;  %2773 = vmatprep.subr.mxu1 %v3348_v45 }
  0x94   : > { %2913 = vset.pattern.permute.xlu0 %v3082_v4  ;;  %2702 = vmatprep.mubr.f32.mxu1 %v426_v7  ;;  %v3090_v4 = vmov 12  }
  0x95   : > { %2732 = vmatpush3.msra.mxu0 %v5324_v6  ;;  %2774 = vmatpush3.msra.mxu1 %v3348_v45 }
  0x96   : > { %1542 = vperm.xlu1 %2912, %v3391_v59   ;;  %1526 = vperm.xlu0 %2913, %v3462_v60  }
  0x97   : > { %2703 = vmatmul.mubr.f32.gmra.mxu1 %v5325_v9  ;;  %2733 = vmatprep.subr.mxu0 %v5326_v10  ;;  %v3091_v9 = vmov 13  }
  0x98   : > { %2775 = vmatprep.subr.mxu1 %v3363_v50  ;;  %2661 = vmatprep.mubr.f32.mxu0 %v3597_v19 }
  0x99   : > { %2734 = vmatpush3.msra.mxu0 %v5326_v10  ;;  %2776 = vmatpush3.msra.mxu1 %v3363_v50 }
  0x9a   : > { %2662 = vmatmul.mubr.f32.gmra.mxu0 %v3610_v14  ;;  %2735 = vmatprep.subr.mxu0 %v5327_v17 }
  0x9b   : > { %2777 = vmatprep.subr.mxu1 %v3375_v54  ;;  %2705 = vmatprep.mubr.f32.mxu1 %v446_v37 }
  0x9c   : > { %2736 = vmatpush3.msra.mxu0 %v5327_v17  ;;  %2778 = vmatpush3.msra.mxu1 %v3375_v54 }
  0x9d   : > { %1550 = vperm.xlu1 %2912, %v3428_v30   ;;  %1538 = vperm.xlu0 %2913, %v3504_v62  }
  0x9e   : > { %2706 = vmatmul.mubr.f32.gmra.mxu1 %v5328_v20  ;;  %2737 = vmatprep.subr.mxu0 %v5329_v21 }
  0x9f   : > { %2779 = vmatprep.subr.mxu1 %v3406_v1  ;;  %2664 = vmatprep.mubr.f32.mxu0 %v3629_v18  ;;  %v3772_v23 = vpop.permute.xlu1 %1309  ;;  %v3087_v18 = vmov 9  }
  0xa0   : > { %2738 = vmatpush3.msra.mxu0 %v5329_v21  ;;  %2780 = vmatpush3.msra.mxu1 %v3406_v1 }
  0xa1   : > { %2665 = vmatmul.mubr.f32.gmra.mxu0 %v3638_v11  ;;  %2739 = vmatprep.subr.mxu0 %v5330_v24 }
  0xa2   : > { %2781 = vmatprep.subr.mxu1 %v3422_v12  ;;  %2708 = vmatprep.mubr.f32.mxu1 %v466_v55 }
  0xa3   : > { %2740 = vmatpush3.msra.mxu0 %v5330_v24  ;;  %2782 = vmatpush3.msra.mxu1 %v3422_v12  ;;  %v3783_v25 = vpop.permute.xlu1 %1314 }
  0xa4   : > { %5331 = vst [vmem:[#allocation5_spill] sm:$0xff] %v3783_v25  ;;  %2915 = vset.pattern.permute.xlu1 %v3083_v27  ;;  %1546 = vperm.xlu0 %2913, %v3519_v57  }
  0xa5   : > { %2709 = vmatmul.mubr.f32.gmra.mxu1 %v476_v35  ;;  %2741 = vmatprep.subr.mxu0 %v5332_v28 }
  0xa6   : > { %2783 = vmatprep.subr.mxu1 %v3448_v43  ;;  %1582 = vperm.xlu1 %2915, %v3462_v60  }
  0xa7   : > { %2742 = vmatpush3.msra.mxu0 %v5332_v28  ;;  %2743 = vmatprep.mubr.f32.mxu0 %v3521_v0  ;;  %v3797_v39 = vpop.permute.xlu1 %1324 }
  0xa8   : > { %2784 = vmatpush3.msra.mxu1 %v3448_v43  ;;  %2744 = vmatmul.mubr.f32.vlgmr.msra.gmra.mxu0 %v5333_v33  ;;  %5334 = vst [vmem:[#allocation6_spill] sm:$0xff] %v3797_v39  ;;  %v3085_v43 = vmov 7  }
  0xa9   : > { %2785 = vmatprep.subr.mxu1 %v3458_v56  ;;  %2787 = vmatprep.mubr.f32.mxu1 %v3521_v0 }
  0xaa   : > { %2786 = vmatpush3.msra.mxu1 %v3458_v56  ;;  %2914 = vset.pattern.permute.xlu0 %v3083_v27 }
  0xab   : > { %2788 = vmatmul.mubr.f32.vlgmr.msra.gmra.mxu1 %v5333_v33  ;;  %1586 = vperm.xlu1 %2915, %v3339_v41   ;;  %v3809_v44 = vpop.permute.xlu1 %1334 }
  0xac   : > { %1578 = vperm.xlu0 %2914, %v3479_v31   ;;  %2746 = vmatprep.mubr.f32.mxu0 %v3558_v3  ;;  %5335 = vst [vmem:[#allocation7_spill] sm:$0xff] %v3809_v44  ;;  %v2956_v44 = vld [vmem:[%s3327_s4 + $0x8] sm:$0xff] }
  0xad   : > { %2747 = vmatmul.mubr.f32.gmra.mxu0 %v3562_v40  ;;  %2790 = vmatprep.mubr.f32.mxu1 %v3558_v3 }
  0xae   : > { %2749 = vmatprep.mubr.f32.mxu0 %v3582_v16 }
  0xaf   : > { %2791 = vmatmul.mubr.f32.gmra.mxu1 %v3562_v40  ;;  %1594 = vperm.xlu1 %2915, %v3504_v62   ;;  %v3086_v40 = vmov 8  }
  0xb0   : > { %1590 = vperm.xlu0 %2914, %v3357_v48   ;;  %2793 = vmatprep.mubr.f32.mxu1 %v3582_v16  ;;  %v3820_v45 = vpop.permute.xlu1 %1358 }
  0xb1   : > { %2750 = vmatmul.mubr.f32.gmra.mxu0 %v3590_v13 }
  0xb2   : > { %2752 = vmatprep.mubr.f32.mxu0 %v3614_v29 }
  0xb3   : > { %2794 = vmatmul.mubr.f32.gmra.mxu1 %v3590_v13  ;;  %1602 = vperm.xlu1 %2915, %v3519_v57   ;;  %v3827_v54 = vpop.permute.xlu0 %1299 }
  0xb4   : > { %1598 = vperm.xlu0 %2914, %v3391_v59   ;;  %2796 = vmatprep.mubr.f32.mxu1 %v3614_v29  ;;  %v3825_v50 = vpop.permute.xlu1 %1362  ;;  %5336 = vst [vmem:[#allocation8_spill] sm:$0xff] %v3827_v54  ;;  %v3894_v29 = vld [vmem:[%s3327_s4 + $0x10] sm:$0xff] }
  0xb5   : > { %2753 = vmatmul.mubr.f32.gmra.mxu0 %v3621_v42 }
  0xb7   : > { %2797 = vmatmul.mubr.f32.gmra.mxu1 %v3621_v42  ;;  %2916 = vset.pattern.permute.xlu1 %v3084_v49  ;;  %v3088_v42 = vmov 10  }
  0xb8   : > { %1606 = vperm.xlu0 %2914, %v3428_v30   ;;  %1634 = vperm.xlu1 %2916, %v3479_v31   ;;  %v3835_v0 = vpop.permute.xlu0 %1304 }
  0xb9   : > { %v3833_v58 = vpop.permute.xlu1 %1370 }
  0xbc   : > { %2917 = vset.pattern.permute.xlu0 %v3084_v49  ;;  %1642 = vperm.xlu1 %2916, %v3339_v41  }
  0xbd   : > { %1638 = vperm.xlu0 %2917, %v3462_v60   ;;  %v3841_v12 = vpop.permute.xlu0 %1319 }
  0xbe   : > { %v3839_v1 = vpop.permute.xlu1 %1378 }
  0xbf   : > { %5337 = vst [vmem:[#allocation9_spill] sm:$0xff] %v3839_v1 }
  0xc0   : > { %1646 = vperm.xlu1 %2916, %v3357_v48  }
  0xc1   : > { %1650 = vperm.xlu0 %2917, %v3504_v62   ;;  %v3848_v8 = vpop.permute.xlu0 %1329 }
  0xc2   : > { %5339 = vst [vmem:[#allocation11_spill] sm:$0xff] %v3848_v8 }
  0xc4   : > { %1654 = vperm.xlu1 %2916, %v3391_v59   ;;  %v3846_v56 = vpop.permute.xlu1 %1410 }
  0xc5   : > { %1658 = vperm.xlu0 %2917, %v3519_v57   ;;  %5338 = vst [vmem:[#allocation10_spill] sm:$0xff] %v3846_v56 }
  0xc8   : > { %1662 = vperm.xlu1 %2916, %v3428_v30   ;;  %v3855_v32 = vpop.permute.xlu0 %1354 }
  0xc9   : > { %2918 = vset.pattern.permute.xlu0 %v3085_v43  ;;  %5340 = vst [vmem:[#allocation12_spill] sm:$0xff] %v3855_v32 }
  0xca   : > { %1690 = vperm.xlu0 %2918, %v3479_v31   ;;  %v3853_v38 = vpop.permute.xlu1 %1418 }
  0xcc   : > { %2919 = vset.pattern.permute.xlu1 %v3085_v43  ;;  %v3980_v43 = vld [vmem:[%s3327_s4 + $0x38] sm:$0xff] }
  0xcd   : > { %1694 = vperm.xlu1 %2919, %v3462_v60  }
  0xce   : > { %1702 = vperm.xlu0 %2918, %v3357_v48   ;;  %v3862_v51 = vpop.permute.xlu0 %1366 }
  0xcf   : > { %5342 = vst [vmem:[#allocation14_spill] sm:$0xff] %v3862_v51 }
  0xd0   : > { %v3860_v3 = vpop.permute.xlu1 %1422 }
  0xd1   : > { %1698 = vperm.xlu1 %2919, %v3339_v41   ;;  %5341 = vst [vmem:[#allocation13_spill] sm:$0xff] %v3860_v3 }
  0xd2   : > { %1710 = vperm.xlu0 %2918, %v3391_v59  }
  0xd4   : > { %v3869_v15 = vpop.permute.xlu0 %1374 }
  0xd5   : > { %1706 = vperm.xlu1 %2919, %v3504_v62   ;;  %5344 = vst [vmem:[#allocation16_spill] sm:$0xff] %v3869_v15 }
  0xd6   : > { %1718 = vperm.xlu0 %2918, %v3428_v30   ;;  %v3867_v63 = vpop.permute.xlu1 %1430 }
  0xd7   : > { %5343 = vst [vmem:[#allocation15_spill] sm:$0xff] %v3867_v63 }
  0xd9   : > { %1714 = vperm.xlu1 %2919, %v3519_v57  }
  0xda   : > { %2921 = vset.pattern.permute.xlu0 %v3086_v40  ;;  %v3875_v7 = vpop.permute.xlu0 %1382 }
  0xdb   : > { %1750 = vperm.xlu0 %2921, %v3462_v60   ;;  %v3873_v16 = vpop.permute.xlu1 %1438  ;;  %5346 = vst [vmem:[#allocation18_spill] sm:$0xff] %v3875_v7 }
  0xdc   : > { %5345 = vst [vmem:[#allocation17_spill] sm:$0xff] %v3873_v16 }
  0xdd   : > { %2920 = vset.pattern.permute.xlu1 %v3086_v40 }
  0xde   : > { %1746 = vperm.xlu1 %2920, %v3479_v31  }
  0xdf   : > { %1762 = vperm.xlu0 %2921, %v3504_v62  }
  0xe2   : > { %1754 = vperm.xlu1 %2920, %v3339_v41  }
  0xe3   : > { %1770 = vperm.xlu0 %2921, %v3519_v57   ;;  %v3882_v19 = vpop.permute.xlu0 %1414 }
  0xe5   : > { %v3880_v13 = vpop.permute.xlu1 %1470 }
  0xe6   : > { %1758 = vperm.xlu1 %2920, %v3357_v48  }
  0xe7   : > { %2922 = vset.pattern.permute.xlu0 %v3087_v18 }
  0xe8   : > { %1802 = vperm.xlu0 %2922, %v3479_v31  }
  0xea   : > { %1766 = vperm.xlu1 %2920, %v3391_v59   ;;  %v3889_v14 = vpop.permute.xlu0 %1426 }
  0xec   : > { %1814 = vperm.xlu0 %2922, %v3357_v48   ;;  %v3887_v41 = vpop.permute.xlu1 %1474 }
  0xee   : > { %1774 = vperm.xlu1 %2920, %v3428_v30  }
  0xf0   : > { %1822 = vperm.xlu0 %2922, %v3391_v59  }
  0xf1   : > { %v3899_v48 = vpop.permute.xlu0 %1434 }
  0xf2   : > { %2923 = vset.pattern.permute.xlu1 %v3087_v18  ;;  %5347 = vst [vmem:[#allocation19_spill] sm:$0xff] %v3899_v48 }
  0xf3   : > { %1806 = vperm.xlu1 %2923, %v3462_v60   ;;  %v3897_v37 = vpop.permute.xlu1 %1482 }
  0xf4   : > { %1830 = vperm.xlu0 %2922, %v3428_v30  }
  0xf7   : > { %1810 = vperm.xlu1 %2923, %v3894_v29  }
  0xf8   : > { %2925 = vset.pattern.permute.xlu0 %v3088_v42 }
  0xf9   : > { %1862 = vperm.xlu0 %2925, %v3462_v60   ;;  %v3904_v22 = vpop.permute.xlu1 %1490 }
  0xfa   : > { %5348 = vst [vmem:[#allocation20_spill] sm:$0xff] %v3904_v22  ;;  %v3906_v11 = vpop.permute.xlu0 %1466 }
  0xfb   : > { %1818 = vperm.xlu1 %2923, %v3504_v62   ;;  %5349 = vst [vmem:[#allocation21_spill] sm:$0xff] %v3906_v11 }
  0xfd   : > { %1874 = vperm.xlu0 %2925, %v3504_v62  }
  0xff   : > { %1826 = vperm.xlu1 %2923, %v3519_v57   ;;  %v3912_v26 = vpop.permute.xlu0 %1478 }
 0x100   : > { %v3910_v55 = vpop.permute.xlu1 %1522  ;;  %5351 = vst [vmem:[#allocation23_spill] sm:$0xff] %v3912_v26  ;;  %v3093_v26 = vmov 15  }
 0x101   : > { %1882 = vperm.xlu0 %2925, %v3519_v57   ;;  %5350 = vst [vmem:[#allocation22_spill] sm:$0xff] %v3910_v55  ;;  %v2957_v55 = vld [vmem:[%s3327_s4] sm:$0xff] }
 0x103   : > { %2924 = vset.pattern.permute.xlu1 %v3088_v42 }
 0x104   : > { %1858 = vperm.xlu1 %2924, %v3479_v31   ;;  %v3919_v61 = vpop.permute.xlu0 %1486 }
 0x105   : > { %2926 = vset.pattern.permute.xlu0 %v3089_v47  ;;  %v3917_v35 = vpop.permute.xlu1 %1530  ;;  %5352 = vst [vmem:[#allocation24_spill] sm:$0xff] %v3919_v61 }
 0x106   : > { %1914 = vperm.xlu0 %2926, %v3479_v31  }
 0x108   : > { %1866 = vperm.xlu1 %2924, %v3894_v29   ;;  %v3970_v27 = vpop.f32.mrf.mxu1 }
 0x109   : > { %v3929_v46 = vpop.permute.xlu0 %1494 }
 0x10a   : > { %1926 = vperm.xlu0 %2926, %v3922_v34   ;;  %v3927_v2 = vpop.permute.xlu1 %1534  ;;  %5354 = vst [vmem:[#allocation26_spill] sm:$0xff] %v3929_v46  ;;  %v3986_v18 = vpop.f32.mrf.mxu1 }
 0x10b   : > { %5353 = vst [vmem:[#allocation25_spill] sm:$0xff] %v3927_v2 }
 0x10c   : > { %1870 = vperm.xlu1 %2924, %v3922_v34   ;;  %v3965_v21 = vpop.f32.mrf.mxu0 }
 0x10e   : > { %1934 = vperm.xlu0 %2926, %v3391_v59   ;;  %v3975_v33 = vpop.f32.mrf.mxu0 }
 0x110   : > { %1878 = vperm.xlu1 %2924, %v3932_v53  }
 0x111   : > { %v3937_v36 = vpop.permute.xlu1 %1542  ;;  %v3939_v52 = vpop.permute.xlu0 %1526 }
 0x112   : > { %1942 = vperm.xlu0 %2926, %v3428_v30   ;;  %5355 = vst [vmem:[#allocation27_spill] sm:$0xff] %v3937_v36 }
 0x114   : > { %1886 = vperm.xlu1 %2924, %v3428_v30  }
 0x116   : > { %2929 = vset.pattern.permute.xlu0 %v3090_v4 }
 0x117   : > { %1974 = vperm.xlu0 %2929, %v3462_v60  }
 0x118   : > { %2927 = vset.pattern.permute.xlu1 %v3089_v47  ;;  %v3943_v59 = vpop.permute.xlu1 %1550  ;;  %v3946_v5 = vpop.permute.xlu0 %1538 }
 0x119   : > { %1918 = vperm.xlu1 %2927, %v3462_v60   ;;  %5356 = vst [vmem:[#allocation28_spill] sm:$0xff] %v3943_v59 }
 0x11b   : > { %1986 = vperm.xlu0 %2929, %v3504_v62  }
 0x11d   : > { %1922 = vperm.xlu1 %2927, %v3894_v29  }
 0x11f   : > { %1994 = vperm.xlu0 %2929, %v3519_v57   ;;  %v3953_v6 = vpop.permute.xlu0 %1546 }
 0x120   : > { %5357 = vst [vmem:[#allocation29_spill] sm:$0xff] %v3953_v6 }
 0x121   : > { %1930 = vperm.xlu1 %2927, %v3504_v62   ;;  %v3951_v30 = vpop.permute.xlu1 %1582 }
 0x122   : > { %v3984_v40 = vpop.f32.mrf.mxu0 }
 0x123   : > { %2930 = vset.pattern.permute.xlu0 %v3091_v9 }
 0x124   : > { %2026 = vperm.xlu0 %2930, %v3479_v31   ;;  %v3994_v59 = vpop.f32.mrf.mxu0 }
 0x125   : > { %1938 = vperm.xlu1 %2927, %v3519_v57  }
 0x126   : > { %v3957_v10 = vpop.permute.xlu1 %1586  ;;  %v3998_v46 = vpop.f32.mrf.mxu1 }
 0x127   : > { %v3959_v17 = vpop.permute.xlu0 %1578 }
 0x128   : > { %5358 = vst [vmem:[#allocation30_spill] sm:$0xff] %v3959_v17  ;;  %2038 = vperm.xlu0 %2930, %v3922_v34   ;;  %v4008_v36 = vpop.f32.mrf.mxu1 }
 0x129   : > { %2928 = vset.pattern.permute.xlu1 %v3090_v4  ;;  %v3092_v4 = vmov 14  }
 0x12a   : > { %1970 = vperm.xlu1 %2928, %v3479_v31   ;;  %v3963_v20 = vpop.permute.xlu1 %1594 }
 0x12b   : > { %5359 = vst [vmem:[#allocation31_spill] sm:$0xff] %v3963_v20  ;;  %v3967_v24 = vpop.permute.xlu0 %1590 }
 0x12c   : > { %5360 = vst [vmem:[#allocation32_spill] sm:$0xff] %v3967_v24  ;;  %2046 = vperm.xlu0 %2930, %v3932_v53  }
 0x12d   : > { %v4018_v2 = vpop.f32.mrf.mxu1 }
 0x12e   : > { %1978 = vperm.xlu1 %2928, %v3894_v29   ;;  %v3973_v28 = vpop.permute.xlu1 %1602 }
 0x12f   : > { %5361 = vst [vmem:[#allocation33_spill] sm:$0xff] %v3973_v28  ;;  %v3977_v49 = vpop.permute.xlu0 %1598 }
 0x130   : > { %5362 = vst [vmem:[#allocation34_spill] sm:$0xff] %v3977_v49  ;;  %2054 = vperm.xlu0 %2930, %v3980_v43  }
 0x132   : > { %1982 = vperm.xlu1 %2928, %v3922_v34  }
 0x133   : > { %v3988_v42 = vpop.permute.xlu1 %1634  ;;  %v3990_v47 = vpop.permute.xlu0 %1606 }
 0x134   : > { %5363 = vst [vmem:[#allocation35_spill] sm:$0xff] %v3988_v42  ;;  %5364 = vst [vmem:[#allocation36_spill] sm:$0xff] %v3990_v47  ;;  %2933 = vset.pattern.permute.xlu0 %v3092_v4  ;;  %v4004_v47 = vpop.f32.mrf.mxu0 }
 0x135   : > { %2086 = vperm.xlu0 %2933, %v3462_v60  }
 0x136   : > { %1990 = vperm.xlu1 %2928, %v3932_v53   ;;  %v4013_v24 = vpop.f32.mrf.mxu0 }
 0x137   : > { %v3996_v49 = vpop.permute.xlu1 %1642 }
 0x138   : > { %v4000_v16 = vpop.permute.xlu0 %1638 }
 0x139   : > { %2098 = vperm.xlu0 %2933, %v3504_v62  }
 0x13a   : > { %1998 = vperm.xlu1 %2928, %v3980_v43  }
 0x13b   : > { %v4006_v7 = vpop.permute.xlu1 %1646 }
 0x13c   : > { %5365 = vst [vmem:[#allocation37_spill] sm:$0xff] %v4006_v7  ;;  %v4010_v60 = vpop.permute.xlu0 %1650  ;;  %v4023_v7 = vpop.f32.mrf.mxu0 }
 0x13d   : > { %5366 = vst [vmem:[#allocation38_spill] sm:$0xff] %v4010_v60  ;;  %2106 = vperm.xlu0 %2933, %v3519_v57  }
 0x13e   : > { %2931 = vset.pattern.permute.xlu1 %v3091_v9  ;;  %v4028_v9 = vpop.f32.mrf.mxu1  ;;  %v4032_v39 = vpop.f32.mrf.mxu0 }
 0x13f   : > { %2030 = vperm.xlu1 %2931, %v2956_v44   ;;  %v4016_v61 = vpop.permute.xlu1 %1654 }
 0x140   : > { %5367 = vst [vmem:[#allocation39_spill] sm:$0xff] %v4016_v61  ;;  %v4020_v63 = vpop.permute.xlu0 %1658  ;;  %v4036_v61 = vpop.f32.mrf.mxu1 }
 0x141   : > { %5368 = vst [vmem:[#allocation40_spill] sm:$0xff] %v4020_v63  ;;  %2934 = vset.pattern.permute.xlu0 %v3093_v26  ;;  %v2657_v25 = vpop.f32.mrf.mxu0 }
 0x142   : > { %2138 = vperm.xlu0 %2934, %v3479_v31  }
 0x143   : > { %2034 = vperm.xlu1 %2931, %v3894_v29   ;;  %v4026_v15 = vpop.permute.xlu1 %1662  ;;  %v777_v17 = vpop.f32.mrf.mxu0 }
 0x144   : > { %5369 = vst [vmem:[#allocation41_spill] sm:$0xff] %v4026_v15  ;;  %v4044_v15 = vpop.f32.mrf.mxu1 }
 0x145   : > { %v4030_v3 = vpop.permute.xlu0 %1690 }
 0x146   : > { %5370 = vst [vmem:[#allocation42_spill] sm:$0xff] %v4030_v3  ;;  %2150 = vperm.xlu0 %2934, %v3922_v34  }
 0x147   : > { %2042 = vperm.xlu1 %2931, %v3504_v62   ;;  %v2701_v62 = vpop.f32.mrf.mxu1 }
 0x148   : > { %v4038_v31 = vpop.permute.xlu1 %1694 }
 0x149   : > { %v4040_v51 = vpop.permute.xlu0 %1702  ;;  %v915_v63 = vpop.f32.mrf.mxu1 }
 0x14a   : > { %5371 = vst [vmem:[#allocation43_spill] sm:$0xff] %v4040_v51  ;;  %2158 = vperm.xlu0 %2934, %v3932_v53  }
 0x14b   : > { %2050 = vperm.xlu1 %2931, %v3519_v57  }
 0x14c   : > { %v4046_v3 = vpop.permute.xlu1 %1698 }
 0x14d   : > { %v4048_v42 = vpop.permute.xlu0 %1710 }
 0x14e   : > { %5372 = vst [vmem:[#allocation44_spill] sm:$0xff] %v4048_v42  ;;  %2166 = vperm.xlu0 %2934, %v3980_v43  }
 0x14f   : > { %2932 = vset.pattern.permute.xlu1 %v3092_v4 }
 0x150   : > { %2082 = vperm.xlu1 %2932, %v2957_v55   ;;  %v4052_v11 = vpop.permute.xlu1 %1706 }
 0x151   : > { %5373 = vst [vmem:[#allocation45_spill] sm:$0xff] %v4052_v11  ;;  %v4054_v51 = vpop.permute.xlu0 %1718 }
 0x152   : > { %5374 = vst [vmem:[#allocation46_spill] sm:$0xff] %v4054_v51  ;;  %v2660_v56 = vpop.f32.mrf.mxu0  ;;  %v638_v51 = vadd.f32 %v3970_v27, %v3965_v21 }
 0x154   : > { %2090 = vperm.xlu1 %2932, %v3894_v29   ;;  %v4057_v57 = vpop.permute.xlu1 %1714  ;;  %v791_v42 = vpop.f32.mrf.mxu0  ;;  %v785_v1 = vadd.f32 %v2657_v25, %v638_v51  ;;  %v632_v51 = vadd.f32 %v3986_v18, %v3975_v33 }
 0x155   : > { %5375 = vst [vmem:[#allocation47_spill] sm:$0xff] %v4057_v57 }
 0x156   : > { %v4059_v32 = vpop.permute.xlu0 %1750  ;;  %v924_v60 = vadd.f32 %v2701_v62, %v785_v1  ;;  %v778_v18 = vadd.f32 %v777_v17, %v632_v51 }
 0x157   : > { %v2704_v54 = vpop.f32.mrf.mxu1 }
 0x158   : > { %2094 = vperm.xlu1 %2932, %v3922_v34   ;;  %v916_v51 = vadd.f32 %v915_v63, %v778_v18 }
 0x159   : > { %v4062_v4 = vpop.permute.xlu1 %1746  ;;  %v931_v28 = vpop.f32.mrf.mxu1 }
 0x15a   : > { %5376 = vst [vmem:[#allocation48_spill] sm:$0xff] %v4062_v4  ;;  %v4064_v55 = vpop.permute.xlu0 %1762  ;;  %v2663_v6 = vpop.f32.mrf.mxu0 }
 0x15b   : > { %5377 = vst [vmem:[#allocation49_spill] sm:$0xff] %v4064_v55 }
 0x15c   : > { %2102 = vperm.xlu1 %2932, %v3932_v53   ;;  %v805_v57 = vpop.f32.mrf.mxu0 }
 0x15d   : > { %v4069_v22 = vpop.permute.xlu1 %1754 }
 0x15e   : > { %v4071_v48 = vpop.permute.xlu0 %1770  ;;  %v2707_v8 = vpop.f32.mrf.mxu1 }
 0x15f   : > { %5378 = vst [vmem:[#allocation50_spill] sm:$0xff] %v4071_v48  ;;  %v644_v48 = vadd.f32 %v4008_v36, %v3994_v59  ;;  %v662_v36 = vadd.f32 %v4018_v2, %v4004_v47  ;;  %v674_v47 = vadd.f32 %v4036_v61, %v4023_v7 }
 0x160   : > { %2110 = vperm.xlu1 %2932, %v3980_v43   ;;  %v947_v34 = vpop.f32.mrf.mxu1 }
 0x161   : > { %v4074_v4 = vpop.permute.xlu1 %1758  ;;  %v2666_v11 = vpop.f32.mrf.mxu0  ;;  %v792_v59 = vadd.f32 %v791_v42, %v644_v48  ;;  %v813_v48 = vadd.f32 %v2663_v6, %v662_v36 }
 0x162   : > { %5379 = vst [vmem:[#allocation51_spill] sm:$0xff] %v4074_v4 }
 0x163   : > { %v4076_v55 = vpop.permute.xlu0 %1802  ;;  %v819_v53 = vpop.f32.mrf.mxu0  ;;  %v932_v2 = vadd.f32 %v931_v28, %v792_v59  ;;  %v956_v61 = vadd.f32 %v2707_v8, %v813_v48 }
 0x164   : > { %2935 = vset.pattern.permute.xlu1 %v3093_v26 }
 0x165   : > { %2142 = vperm.xlu1 %2935, %v2956_v44   ;;  %v4078_v21 = vpop.permute.xlu1 %1766  ;;  %v4080_v27 = vpop.f32.mrf.mxu1  ;;  %v650_v44 = vadd.f32 %v3998_v46, %v3984_v40 }
 0x166   : > { %5380 = vst [vmem:[#allocation52_spill] sm:$0xff] %v4078_v21  ;;  %v656_v21 = vadd.f32 %v4028_v9, %v4013_v24  ;;  %v668_v24 = vadd.f32 %v4044_v15, %v4032_v39 }
 0x167   : > { %v4084_v20 = vpop.permute.xlu0 %1814  ;;  %v963_v43 = vpop.f32.mrf.mxu1  ;;  %v799_v46 = vadd.f32 %v2660_v56, %v650_v44  ;;  %v2959_v44 = vld [vmem:[%s3327_s4 + $0x30] sm:$0xff] }
 0x168   : > { %5381 = vst [vmem:[#allocation53_spill] sm:$0xff] %v4084_v20  ;;  %v2745_v25 = vpop.f32.mrf.mxu0  ;;  %v806_v17 = vadd.f32 %v805_v57, %v656_v21  ;;  %v4124_v57 = vadd.f32 %v2666_v11, %v674_v47  ;;  %v820_v21 = vadd.f32 %v819_v53, %v668_v24 }
 0x169   : > { %v1097_v4 = vadd.f32 %v2745_v25, %v924_v60  ;;  %2146 = vperm.xlu1 %2935, %v3894_v29   ;;  %v4089_v1 = vpop.permute.xlu1 %1774  ;;  %v2958_v25 = vld [vmem:[%s3327_s4 + $0x20] sm:$0xff]  ;;  %v940_v6 = vadd.f32 %v2704_v54, %v799_v46  ;;  %s230_s4 = sand.u32 1, %s3044_s13  }
 0x16a   : > { %5382 = vst [vmem:[#allocation54_spill] sm:$0xff] %v4089_v1  ;;  %v1090_v26 = vpop.f32.mrf.mxu0  ;;  %v948_v63 = vadd.f32 %v947_v34, %v806_v17  ;;  %s2375_s30 = sshll.u32 %s230_s4, 6  ;;  %s5171_s10 = scalar_lea.sflag [#allocation3], %s230_s4 }
 0x16b   : > { %v2789_v62 = vpop.f32.mrf.mxu1  ;;  %v4095_v20 = vpop.permute.xlu0 %1822  ;;  %v1091_v59 = vadd.f32 %v1090_v26, %v916_v51  ;;  %s5026_s9 = scalar_lea.vmem [#allocation2], %s2375_s30 }
 0x16c   : > { %v4099_v33 = vadd.f32 %v2789_v62, %v1097_v4  ;;  %s2251_s15 = sshll.u32 %s5026_s9, 4  ;;  %s5166_s15 = int_to_ptr.vmem [resolvable:$true] %s2251_s15 }
 0x16d   : > { %v2748_v29 = vpop.f32.mrf.mxu0  ;;  %v1219_v60 = vpop.f32.mrf.mxu1  ;;  %2154 = vperm.xlu1 %2935, %v2958_v25   ;;  %v4154_v25 = vadd.f32 %v963_v43, %v820_v21  ;;  %s2968_s30 = scalar_lea.vmem %s5166_s15, 1024 }
 0x16e   : > { %v1266_v40 = vmin.f32 %v4099_v33, 15.0  ;;  %v4103_v1 = vpop.permute.xlu1 %1806  ;;  %v1109_v11 = vadd.f32 %v2748_v29, %v940_v6  ;;  %v4175_v47 = vadd.f32 %v1219_v60, %v1091_v59  ;;  %p2969_p2 = scmp.ne.s32.totalorder %s5166_s15, %s2968_s30 }
 0x16f   : > { %v1102_v42 = vpop.f32.mrf.mxu0  ;;  %v2792_v4 = vpop.f32.mrf.mxu1 }
 0x170   : > { %v4111_v9 = vfloor.f32 %v1266_v40  ;;  %v4113_v56 = vpop.permute.xlu0 %1830  ;;  %v1103_v15 = vadd.f32 %v1102_v42, %v932_v2  ;;  %v4183_v51 = vadd.f32 %v2792_v4, %v1109_v11  ;;  %p2970_p3 = pnand %p2969_p2, %p3179_p5 }
 0x171   : > { %2162 = vperm.xlu1 %2935, %v2959_v44   ;;  %v2751_v28 = vpop.f32.mrf.mxu0  ;;  %v1231_v54 = vpop.f32.mrf.mxu1 }
 0x172   : > { %vm1290_vm0 = vcmp.eq.f32.partialorder %v4111_v9, 0.0  ;;  %vm1346_vm1 = vcmp.eq.f32.partialorder %v4111_v9, 1.0  ;;  %v4118_v7 = vpop.permute.xlu1 %1810  ;;  %vm1402_vm2 = vcmp.eq.f32.partialorder %v4111_v9, 2.0  ;;  %vm1458_vm3 = vcmp.eq.f32.partialorder %v4111_v9, 3.0  ;;  %p2971_p4 = pneg %p2970_p3 }
 0x173   : > { %v1394_v39 = vsel %vm1290_vm0, %v3820_v45, 0.0  ;;  %vm1514_vm4 = vcmp.eq.f32.partialorder %v4111_v9, 4.0  ;;  %v1338_v8 = vsel %vm1290_vm0, %v3835_v0, 0.0  ;;  %vm1570_vm5 = vcmp.eq.f32.partialorder %v4111_v9, 5.0  ;;  %v1114_v48 = vpop.f32.mrf.mxu0 }
 0x174   : > { %v4127_v36 = vpop.permute.xlu0 %1862  ;;  %v1450_v62 = vsel %vm1346_vm1, %v3882_v19, %v1394_v39  ;;  %v1386_v34 = vsel %vm1346_vm1, %v3820_v45, %v1338_v8  ;;  %vm1626_vm6 = vcmp.eq.f32.partialorder %v4111_v9, 6.0  ;;  %v4152_v29 = vadd.f32 %v1231_v54, %v1103_v15 }
 0x175   : > { %v1506_v53 = vsel %vm1402_vm2, %v3880_v13, %v1450_v62  ;;  %v1442_v0 = vsel %vm1402_vm2, %v3882_v19, %v1386_v34  ;;  %vm1682_vm7 = vcmp.eq.f32.partialorder %v4111_v9, 7.0  ;;  %vm1738_vm8 = vcmp.eq.f32.partialorder %v4111_v9, 8.0  ;;  %v4204_v21 = vpop.f32.mrf.mxu0 }
 0x176   : > { %v4143_v26 = vpop.permute.xlu1 %1818  ;;  %v1562_v18 = vsel %vm1458_vm3, %v3939_v52, %v1506_v53  ;;  %v1498_v45 = vsel %vm1458_vm3, %v3880_v13, %v1442_v0  ;;  %v1267_v42 = vmin.f32 %v4152_v29, 15.0  ;;  %v4173_v13 = vpop.f32.mrf.mxu1  ;;  %vm1794_vm9 = vcmp.eq.f32.partialorder %v4111_v9, 9.0  ;;  %v5421_v29 = vld [vmem:[#allocation25_spill] sm:$0xff] }
 0x177   : > { %v1618_v46 = vsel %vm1514_vm4, %v3951_v30, %v1562_v18  ;;  %v1554_v43 = vsel %vm1514_vm4, %v3939_v52, %v1498_v45  ;;  %v1121_v39 = vadd.f32 %v2751_v28, %v956_v61  ;;  %v1115_v15 = vadd.f32 %v1114_v48, %v948_v63  ;;  %v1126_v11 = vpop.f32.mrf.mxu0 }
 0x178   : > { %v4163_v19 = vpop.permute.xlu0 %1874  ;;  %v1674_v2 = vsel %vm1570_vm5, %v4000_v16, %v1618_v46  ;;  %v1610_v24 = vsel %vm1570_vm5, %v3951_v30, %v1554_v43  ;;  %v4196_v30 = vfloor.f32 %v1267_v42  ;;  %vm5300_vm12 = vcmp.eq.f32.partialorder %v4111_v9, 10.0 }
 0x179   : > { %v1730_v17 = vsel %vm1626_vm6, %v4038_v31, %v1674_v2  ;;  %v1666_v44 = vsel %vm1626_vm6, %v4000_v16, %v1610_v24  ;;  %v1127_v24 = vadd.f32 %v1126_v11, %v4154_v25 }
 0x17a   : > { %v4185_v52 = vpop.permute.xlu1 %1826  ;;  %v1786_v60 = vsel %vm1682_vm7, %v4059_v32, %v1730_v17  ;;  %v1722_v4 = vsel %vm1682_vm7, %v4038_v31, %v1666_v44  ;;  %vm1291_vm10 = vcmp.eq.f32.partialorder %v4196_v30, 0.0  ;;  %vm1347_vm11 = vcmp.eq.f32.partialorder %v4196_v30, 1.0  ;;  %v1243_v31 = vpop.f32.mrf.mxu1 }
 0x17b   : > { %v1842_v6 = vsel %vm1738_vm8, %v4103_v1, %v1786_v60  ;;  %v1778_v54 = vsel %vm1738_vm8, %v4059_v32, %v1722_v4  ;;  %v1339_v28 = vsel %vm1291_vm10, %v3772_v23, 0.0  ;;  %v1395_v63 = vsel %vm1291_vm10, %v3825_v50, 0.0 }
 0x17c   : > { %v4206_v16 = vpop.permute.xlu0 %1882  ;;  %v1834_v61 = vsel %vm1794_vm9, %v4103_v1, %v1778_v54  ;;  %vm1403_vm13 = vcmp.eq.f32.partialorder %v4196_v30, 2.0  ;;  %v1387_v59 = vsel %vm1347_vm11, %v3825_v50, %v1339_v28  ;;  %v1451_v32 = vsel %vm1347_vm11, %v3853_v38, %v1395_v63  ;;  %v4235_v53 = vpop.f32.mrf.mxu1 }
 0x17d   : > { %vm1459_vm14 = vcmp.eq.f32.partialorder %v4196_v30, 3.0  ;;  %vm1515_vm15 = vcmp.eq.f32.partialorder %v4196_v30, 4.0  ;;  %v1443_v62 = vsel %vm1403_vm13, %v3853_v38, %v1387_v59  ;;  %v1507_v1 = vsel %vm1403_vm13, %v3887_v41, %v1451_v32 }
 0x17e   : > { %vm1571_vm0 = vcmp.eq.f32.partialorder %v4196_v30, 5.0  ;;  %v4229_v23 = vadd.f32 %v1243_v31, %v1115_v15  ;;  %v1499_v34 = vsel %vm1459_vm14, %v3887_v41, %v1443_v62  ;;  %v1563_v50 = vsel %vm1459_vm14, %v3917_v35, %v1507_v1  ;;  %v1255_v4 = vpop.f32.mrf.mxu1 }
 0x17f   : > { %v4224_v8 = vpop.permute.xlu1 %1858  ;;  %vm1627_vm1 = vcmp.eq.f32.partialorder %v4196_v30, 6.0  ;;  %vm1683_vm2 = vcmp.eq.f32.partialorder %v4196_v30, 7.0  ;;  %v1555_v38 = vsel %vm1515_vm15, %v3917_v35, %v1499_v34  ;;  %v1619_v18 = vsel %vm1515_vm15, %v3957_v10, %v1563_v50  ;;  %v5383_v34 = vld [vmem:[#allocation31_spill] sm:$0xff] }
 0x180   : > { %vm1739_vm3 = vcmp.eq.f32.partialorder %v4196_v30, 8.0  ;;  %vm5301_vm4 = vcmp.eq.f32.partialorder %v4196_v30, 9.0  ;;  %v1611_v41 = vsel %vm1571_vm0, %v3957_v10, %v1555_v38  ;;  %v1675_v45 = vsel %vm1571_vm0, %v3996_v49, %v1619_v18 }
 0x181   : > { %v4237_v0 = vpop.permute.xlu0 %1914  ;;  %v4248_v46 = vsel %vm5300_vm12, %v4127_v36, %v1834_v61  ;;  %v4253_v48 = vsel %vm1794_vm9, %v4127_v36, %v1842_v6  ;;  %v1667_v43 = vsel %vm1627_vm1, %v3996_v49, %v1611_v41  ;;  %v1731_v2 = vsel %vm1627_vm1, %v4046_v3, %v1675_v45  ;;  %v5384_v41 = vld [vmem:[#allocation38_spill] sm:$0xff] }
 0x182   : > { %v5304_v10 = vmin.f32 %v4229_v23, 15.0  ;;  %v1265_v17 = vmin.f32 %v4175_v47, 15.0  ;;  %v1268_v44 = vmin.f32 %v4183_v51, 15.0  ;;  %v1723_v60 = vsel %vm1683_vm2, %v4046_v3, %v1667_v43 }
 0x183   : > { %v4255_v35 = vpop.permute.xlu1 %1866  ;;  %v1787_v36 = vsel %vm1683_vm2, %v4069_v22, %v1731_v2  ;;  %v1779_v6 = vsel %vm1739_vm3, %v4069_v22, %v1723_v60  ;;  %v4280_v15 = vadd.f32 %v4173_v13, %v1121_v39  ;;  %v972_v54 = vadd.f32 %v4080_v27, %v4124_v57  ;;  %v5385_v2 = vld [vmem:[#allocation45_spill] sm:$0xff] }
 0x184   : > { %v4277_v25 = vsel %vm1739_vm3, %v4118_v7, %v1787_v36  ;;  %v4284_v3 = vfloor.f32 %v5304_v10  ;;  %v4291_v31 = vsel %vm5301_vm4, %v4118_v7, %v1779_v6  ;;  %v4297_v13 = vadd.f32 %v1255_v4, %v1127_v24  ;;  %v5386_v60 = vld [vmem:[#allocation49_spill] sm:$0xff] }
 0x185   : > { %v4269_v49 = vpop.permute.xlu0 %1926  ;;  %v4301_v39 = vfloor.f32 %v1265_v17  ;;  %v4309_v7 = vfloor.f32 %v1268_v44  ;;  %v1270_v57 = vmin.f32 %v4280_v15, 15.0  ;;  %v4314_v28 = vadd.f32 %v4204_v21, %v972_v54  ;;  %v5387_v54 = vld [vmem:[#allocation9_spill] sm:$0xff] }
 0x186   : > { %vm1293_vm5 = vcmp.eq.f32.partialorder %v4284_v3, 0.0  ;;  %vm1349_vm6 = vcmp.eq.f32.partialorder %v4284_v3, 1.0  ;;  %vm1405_vm7 = vcmp.eq.f32.partialorder %v4284_v3, 2.0  ;;  %vm1461_vm8 = vcmp.eq.f32.partialorder %v4284_v3, 3.0 }
 0x187   : > { %v4293_v22 = vpop.permute.xlu1 %1870  ;;  %v1397_v61 = vsel %vm1293_vm5, %v3833_v58, 0.0  ;;  %vm1517_vm9 = vcmp.eq.f32.partialorder %v4284_v3, 4.0  ;;  %v1341_v63 = vsel %vm1293_vm5, %v3841_v12, 0.0  ;;  %vm1573_vm10 = vcmp.eq.f32.partialorder %v4284_v3, 5.0 }
 0x188   : > { %v1453_v59 = vsel %vm1349_vm6, %v3889_v14, %v1397_v61  ;;  %v1389_v62 = vsel %vm1349_vm6, %v3833_v58, %v1341_v63  ;;  %v5303_v11 = vmin.f32 %v4297_v13, 15.0  ;;  %vm1629_vm11 = vcmp.eq.f32.partialorder %v4284_v3, 6.0 }
 0x189   : > { %v4305_v27 = vpop.permute.xlu0 %1934  ;;  %v1509_v1 = vsel %vm1405_vm7, %v3897_v37, %v1453_v59  ;;  %vm1685_vm13 = vcmp.eq.f32.partialorder %v4284_v3, 7.0  ;;  %v1445_v12 = vsel %vm1405_vm7, %v3889_v14, %v1389_v62  ;;  %vm1289_vm14 = vcmp.eq.f32.partialorder %v4301_v39, 0.0 }
 0x18a   : > { %v1565_v21 = vsel %vm1461_vm8, %v3946_v5, %v1509_v1  ;;  %vm1741_vm15 = vcmp.eq.f32.partialorder %v4284_v3, 8.0  ;;  %v1501_v58 = vsel %vm1461_vm8, %v3897_v37, %v1445_v12  ;;  %v4345_v38 = vfloor.f32 %v5303_v11  ;;  %v5419_v11 = vld [vmem:[#allocation23_spill] sm:$0xff] }
 0x18b   : > { %v4319_v32 = vpop.permute.xlu1 %1878  ;;  %v1621_v50 = vsel %vm1517_vm9, %v5383_v34, %v1565_v21  ;;  %vm1345_vm0 = vcmp.eq.f32.partialorder %v4301_v39, 1.0  ;;  %vm1797_vm1 = vcmp.eq.f32.partialorder %v4284_v3, 9.0  ;;  %v1557_v18 = vsel %vm1517_vm9, %v3946_v5, %v1501_v58 }
 0x18c   : > { %v1677_v37 = vsel %vm1573_vm10, %v5384_v41, %v1621_v50  ;;  %vm5302_vm2 = vcmp.eq.f32.partialorder %v4284_v3, 10.0  ;;  %vm1401_vm3 = vcmp.eq.f32.partialorder %v4301_v39, 2.0  ;;  %v1613_v43 = vsel %vm1573_vm10, %v5383_v34, %v1557_v18  ;;  %v5389_v34 = vld [vmem:[#allocation19_spill] sm:$0xff] }
 0x18d   : > { %v4348_v14 = vpop.permute.xlu0 %1942  ;;  %v1733_v24 = vsel %vm1629_vm11, %v5385_v2, %v1677_v37  ;;  %vm1295_vm5 = vcmp.eq.f32.partialorder %v4345_v38, 0.0  ;;  %vm1457_vm6 = vcmp.eq.f32.partialorder %v4301_v39, 3.0  ;;  %v1669_v5 = vsel %vm1629_vm11, %v5384_v41, %v1613_v43  ;;  %v5390_v41 = vld [vmem:[#allocation20_spill] sm:$0xff]  ;;  %v5391_v43 = vld [vmem:[#allocation29_spill] sm:$0xff] }
 0x18e   : > { %v1789_v36 = vsel %vm1685_vm13, %v5386_v60, %v1733_v24  ;;  %vm1351_vm7 = vcmp.eq.f32.partialorder %v4345_v38, 1.0  ;;  %v1725_v4 = vsel %vm1685_vm13, %v5385_v2, %v1669_v5  ;;  %v1399_v61 = vsel %vm1295_vm5, %v5387_v54, 0.0  ;;  %v5392_v5 = vld [vmem:[#allocation33_spill] sm:$0xff] }
 0x18f   : > { %v4359_v45 = vpop.permute.xlu1 %1886  ;;  %v1845_v6 = vsel %vm1741_vm15, %v4143_v26, %v1789_v36  ;;  %vm1407_vm9 = vcmp.eq.f32.partialorder %v4345_v38, 2.0  ;;  %v1781_v63 = vsel %vm1741_vm15, %v5386_v60, %v1725_v4  ;;  %vm1463_vm11 = vcmp.eq.f32.partialorder %v4345_v38, 3.0  ;;  %v5393_v36 = vld [vmem:[#allocation8_spill] sm:$0xff] }
 0x190   : > { %v4394_v59 = vsel %vm1797_vm1, %v4163_v19, %v1845_v6  ;;  %vm1519_vm13 = vcmp.eq.f32.partialorder %v4345_v38, 4.0  ;;  %v1837_v62 = vsel %vm1797_vm1, %v4143_v26, %v1781_v63  ;;  %vm1575_vm4 = vcmp.eq.f32.partialorder %v4345_v38, 5.0  ;;  %v5388_v26 = vld [vmem:[#allocation11_spill] sm:$0xff]  ;;  %v5394_v6 = vld [vmem:[#allocation12_spill] sm:$0xff] }
 0x191   : > { %vm1631_vm10 = vcmp.eq.f32.partialorder %v4345_v38, 6.0  ;;  %vm1687_vm15 = vcmp.eq.f32.partialorder %v4345_v38, 7.0  ;;  %v4413_v21 = vsel %vm5302_vm2, %v4163_v19, %v1837_v62  ;;  %vm1743_vm12 = vcmp.eq.f32.partialorder %v4345_v38, 8.0 }
 0x192   : > { %v4408_v12 = vpop.permute.xlu0 %1974  ;;  %v1343_v58 = vsel %vm1295_vm5, %v5388_v26, 0.0  ;;  %v1455_v50 = vsel %vm1351_vm7, %v5389_v34, %v1399_v61  ;;  %vm1799_vm1 = vcmp.eq.f32.partialorder %v4345_v38, 9.0  ;;  %vm1855_vm2 = vcmp.eq.f32.partialorder %v4345_v38, 10.0  ;;  %v5395_v26 = vld [vmem:[#allocation40_spill] sm:$0xff] }
 0x193   : > { %v1391_v18 = vsel %vm1351_vm7, %v5387_v54, %v1343_v58  ;;  %v1511_v19 = vsel %vm1407_vm9, %v5390_v41, %v1455_v50  ;;  %vm1737_vm5 = vcmp.eq.f32.partialorder %v4301_v39, 8.0  ;;  %vm1793_vm8 = vcmp.eq.f32.partialorder %v4301_v39, 9.0  ;;  %v5396_v50 = vld [vmem:[#allocation10_spill] sm:$0xff] }
 0x194   : > { %v4406_v1 = vpop.permute.xlu1 %1918  ;;  %v1447_v37 = vsel %vm1407_vm9, %v5389_v34, %v1391_v18  ;;  %v1567_v2 = vsel %vm1463_vm11, %v5391_v43, %v1511_v19  ;;  %v1337_v4 = vsel %vm1289_vm14, %v5393_v36, 0.0  ;;  %v1393_v54 = vsel %vm1289_vm14, %v5394_v6, 0.0  ;;  %v5397_v19 = vld [vmem:[#allocation47_spill] sm:$0xff]  ;;  %v5399_v36 = vld [vmem:[#allocation50_spill] sm:$0xff] }
 0x195   : > { %v1503_v24 = vsel %vm1463_vm11, %v5390_v41, %v1447_v37  ;;  %v1623_v60 = vsel %vm1519_vm13, %v5392_v5, %v1567_v2  ;;  %v1385_v34 = vsel %vm1345_vm0, %v5394_v6, %v1337_v4  ;;  %v1449_v18 = vsel %vm1345_vm0, %v5396_v50, %v1393_v54  ;;  %v5398_v2 = vld [vmem:[#allocation21_spill] sm:$0xff]  ;;  %v5400_v6 = vld [vmem:[#allocation22_spill] sm:$0xff] }
 0x196   : > { %v4452_v63 = vpop.permute.xlu0 %1986  ;;  %v1559_v62 = vsel %vm1519_vm13, %v5391_v43, %v1503_v24  ;;  %v1679_v58 = vsel %vm1575_vm4, %v5395_v26, %v1623_v60  ;;  %v1441_v43 = vsel %vm1401_vm3, %v5396_v50, %v1385_v34  ;;  %v1505_v24 = vsel %vm1401_vm3, %v5398_v2, %v1449_v18  ;;  %v5402_v34 = vld [vmem:[#allocation30_spill] sm:$0xff] }
 0x197   : > { %v1615_v41 = vsel %vm1575_vm4, %v5392_v5, %v1559_v62  ;;  %v1735_v37 = vsel %vm1631_vm10, %v5397_v19, %v1679_v58  ;;  %v1497_v4 = vsel %vm1457_vm6, %v5398_v2, %v1441_v43  ;;  %v1561_v54 = vsel %vm1457_vm6, %v5400_v6, %v1505_v24  ;;  %v5405_v43 = vld [vmem:[#allocation35_spill] sm:$0xff] }
 0x198   : > { %v4450_v61 = vpop.permute.xlu1 %1922  ;;  %v1671_v60 = vsel %vm1631_vm10, %v5395_v26, %v1615_v41  ;;  %v1791_v5 = vsel %vm1687_vm15, %v5399_v36, %v1735_v37  ;;  %vm5401_vm4 = vcmp.eq.f32.partialorder %v4301_v39, 4.0  ;;  %vm5404_vm0 = vcmp.eq.f32.partialorder %v4301_v39, 5.0 }
 0x199   : > { %v1727_v62 = vsel %vm1687_vm15, %v5397_v19, %v1671_v60  ;;  %v1847_v26 = vsel %vm1743_vm12, %v4185_v52, %v1791_v5  ;;  %v1553_v58 = vsel %vm5401_vm4, %v5400_v6, %v1497_v4  ;;  %vm5403_vm14 = vmmov %vm5401_vm4  ;;  %vm1849_vm6 = vcmp.eq.f32.partialorder %v4301_v39, 10.0 }
 0x19a   : > { %v1617_v50 = vsel %vm5403_vm14, %v5402_v34, %v1561_v54  ;;  %v1783_v41 = vsel %vm1743_vm12, %v5399_v36, %v1727_v62  ;;  %v4510_v19 = vsel %vm1799_vm1, %v4206_v16, %v1847_v26  ;;  %v1609_v37 = vsel %vm5404_vm0, %v5402_v34, %v1553_v58  ;;  %vm5406_vm3 = vmmov %vm5404_vm0  ;;  %v5408_v36 = vld [vmem:[#allocation42_spill] sm:$0xff]  ;;  %v4528_v4 = vpop.permute.xlu0 %1994  ;;  %v5411_v54 = vld [vmem:[#allocation48_spill] sm:$0xff] }
 0x19b   : > { %v1673_v2 = vsel %vm5406_vm3, %v5405_v43, %v1617_v50  ;;  %v1839_v24 = vsel %vm1799_vm1, %v4185_v52, %v1783_v41  ;;  %vm5407_vm12 = vcmp.eq.f32.partialorder %v4301_v39, 6.0  ;;  %vm5410_vm9 = vcmp.eq.f32.partialorder %v4301_v39, 7.0 }
 0x19c   : > { %v4502_v18 = vpop.permute.xlu1 %1930  ;;  %v1665_v60 = vsel %vm5407_vm12, %v5405_v43, %v1609_v37  ;;  %vm5409_vm7 = vmmov %vm5407_vm12  ;;  %v4533_v6 = vsel %vm1855_vm2, %v4206_v16, %v1839_v24  ;;  %vm1851_vm11 = vcmp.eq.f32.partialorder %v4196_v30, 10.0  ;;  %vm5413_vm13 = vcmp.eq.f32.partialorder %v4196_v30, 9.0 }
 0x19d   : > { %v1729_v5 = vsel %vm5409_vm7, %v5408_v36, %v1673_v2  ;;  %v1721_v52 = vsel %vm5410_vm9, %v5408_v36, %v1665_v60  ;;  %vm5412_vm10 = vmmov %vm5410_vm9  ;;  %v4552_v16 = vsel %vm1851_vm11, %v4255_v35, %v4291_v31  ;;  %v4558_v34 = vsel %vm5413_vm13, %v4255_v35, %v4277_v25  ;;  %v5414_v2 = vld [vmem:[#allocation5_spill] sm:$0xff]  ;;  %v5415_v36 = vld [vmem:[#allocation14_spill] sm:$0xff] }
 0x19e   : > { %v1785_v62 = vsel %vm5412_vm10, %v5411_v54, %v1729_v5  ;;  %v1777_v26 = vsel %vm1737_vm5, %v5411_v54, %v1721_v52  ;;  %v4577_v35 = vfloor.f32 %v1270_v57  ;;  %vm1292_vm15 = vcmp.eq.f32.partialorder %v4309_v7, 0.0  ;;  %v5416_v5 = vld [vmem:[#allocation6_spill] sm:$0xff] }
 0x19f   : > { %v1841_v58 = vsel %vm1737_vm5, %v4076_v55, %v1785_v62  ;;  %v1833_v41 = vsel %vm1793_vm8, %v4076_v55, %v1777_v26  ;;  %v1262_v25 = vadd.f32 %v4235_v53, %v4314_v28  ;;  %v4582_v55 = vpop.permute.xlu0 %2026  ;;  %v1340_v24 = vsel %vm1292_vm15, %v5414_v2, 0.0  ;;  %v5417_v26 = vld [vmem:[#allocation13_spill] sm:$0xff] }
 0x1a0   : > { %v4560_v50 = vpop.permute.xlu1 %1938  ;;  %v4568_v37 = vsel %vm1793_vm8, %v4224_v8, %v1841_v58  ;;  %v4573_v31 = vsel %vm1849_vm6, %v4224_v8, %v1833_v41  ;;  %vm1348_vm8 = vcmp.eq.f32.partialorder %v4309_v7, 1.0  ;;  %vm1294_vm1 = vcmp.eq.f32.partialorder %v4577_v35, 0.0  ;;  %v5418_v41 = vld [vmem:[#allocation16_spill] sm:$0xff] }
 0x1a1   : > { %v1272_v8 = vmin.f32 %v1262_v25, 15.0  ;;  %vm1404_vm5 = vcmp.eq.f32.partialorder %v4309_v7, 2.0  ;;  %v1388_v53 = vsel %vm1348_vm8, %v5415_v36, %v1340_v24  ;;  %v1342_v52 = vsel %vm1294_vm1, %v5416_v5, 0.0 }
 0x1a2   : > { %vm1350_vm4 = vcmp.eq.f32.partialorder %v4577_v35, 1.0  ;;  %vm1460_vm14 = vcmp.eq.f32.partialorder %v4309_v7, 3.0  ;;  %v1396_v62 = vsel %vm1292_vm15, %v5415_v36, 0.0  ;;  %v1444_v58 = vsel %vm1404_vm5, %v5417_v26, %v1388_v53 }
 0x1a3   : > { %v4591_v60 = vpop.permute.xlu0 %2038  ;;  %v4601_v54 = vfloor.f32 %v1272_v8  ;;  %vm1406_vm0 = vcmp.eq.f32.partialorder %v4577_v35, 2.0  ;;  %v1390_v25 = vsel %vm1350_vm4, %v5418_v41, %v1342_v52  ;;  %v1398_v24 = vsel %vm1294_vm1, %v5418_v41, 0.0  ;;  %v5420_v41 = vld [vmem:[#allocation15_spill] sm:$0xff] }
 0x1a4   : > { %vm1516_vm3 = vcmp.eq.f32.partialorder %v4309_v7, 4.0  ;;  %v1452_v36 = vsel %vm1348_vm8, %v5417_v26, %v1396_v62  ;;  %v1500_v53 = vsel %vm1460_vm14, %v5419_v11, %v1444_v58  ;;  %v4629_v52 = vsub.f32 %v1266_v40, %v4111_v9 }
 0x1a5   : > { %v4584_v43 = vpop.permute.xlu1 %1970  ;;  %vm1462_vm12 = vcmp.eq.f32.partialorder %v4577_v35, 3.0  ;;  %v1446_v10 = vsel %vm1406_vm0, %v5420_v41, %v1390_v25  ;;  %vm1296_vm7 = vcmp.eq.f32.partialorder %v4601_v54, 0.0  ;;  %v4639_v62 = vsub.f32 %v1265_v17, %v4301_v39  ;;  %v5422_v17 = vld [vmem:[#allocation24_spill] sm:$0xff]  ;;  %v5423_v25 = vld [vmem:[#allocation7_spill] sm:$0xff] }
 0x1a6   : > { %v4644_v26 = vsub.f32 %v1268_v44, %v4309_v7  ;;  %v4649_v33 = vsub.f32 %v1267_v42, %v4196_v30  ;;  %v1454_v40 = vsel %vm1350_vm4, %v5420_v41, %v1398_v24  ;;  %v4659_v47 = vsub.f32 %v1270_v57, %v4577_v35 }
 0x1a7   : > { %v4617_v5 = vpop.permute.xlu0 %2046  ;;  %vm1572_vm9 = vcmp.eq.f32.partialorder %v4309_v7, 5.0  ;;  %v1508_v51 = vsel %vm1404_vm5, %v5419_v11, %v1452_v36  ;;  %v1556_v42 = vsel %vm1516_vm3, %v5421_v29, %v1500_v53  ;;  %vm1518_vm10 = vcmp.eq.f32.partialorder %v4577_v35, 4.0  ;;  %v5426_v53 = vld [vmem:[#allocation32_spill] sm:$0xff] }
 0x1a8   : > { %v1502_v44 = vsel %vm1462_vm12, %v5422_v17, %v1446_v10  ;;  %v1344_v15 = vsel %vm1296_vm7, %v5423_v25, 0.0  ;;  %vm1352_vm13 = vcmp.eq.f32.partialorder %v4601_v54, 1.0  ;;  %v5424_v57 = vmin.f32 %v4229_v23, 15.0  ;;  %v5428_v25 = vld [vmem:[#allocation18_spill] sm:$0xff] }
 0x1a9   : > { %v4597_v28 = vpop.permute.xlu1 %1978  ;;  %v4682_v24 = vsub.f32 %v1272_v8, %v4601_v54  ;;  %v1510_v36 = vsel %vm1406_vm0, %v5422_v17, %v1454_v40  ;;  %vm1408_vm15 = vcmp.eq.f32.partialorder %v4601_v54, 2.0  ;;  %vm1628_vm8 = vcmp.eq.f32.partialorder %v4309_v7, 6.0  ;;  %v5427_v40 = vld [vmem:[#allocation27_spill] sm:$0xff] }
 0x1aa   : > { %v4679_v11 = vsub.f32 %v5424_v57, %v4284_v3  ;;  %vm1684_vm1 = vcmp.eq.f32.partialorder %v4309_v7, 7.0  ;;  %v1564_v23 = vsel %vm1460_vm14, %v5421_v29, %v1508_v51  ;;  %v1612_v8 = vsel %vm1572_vm9, %v5426_v53, %v1556_v42  ;;  %v5429_v42 = vld [vmem:[#allocation17_spill] sm:$0xff] }
 0x1ab   : > { %v4688_v10 = vpop.permute.xlu0 %2054  ;;  %vm1574_vm5 = vcmp.eq.f32.partialorder %v4577_v35, 5.0  ;;  %v1558_v17 = vsel %vm1518_vm10, %v5427_v40, %v1502_v44  ;;  %vm1464_vm4 = vcmp.eq.f32.partialorder %v4601_v54, 3.0  ;;  %v1392_v57 = vsel %vm1352_vm13, %v5428_v25, %v1344_v15 }
 0x1ac   : > { %5425 = vst [vmem:[#allocation31_spill] sm:$0xff] %v4679_v11  ;;  %v1566_v51 = vsel %vm1462_vm12, %v5427_v40, %v1510_v36  ;;  %v1400_v29 = vsel %vm1296_vm7, %v5428_v25, 0.0  ;;  %v1448_v11 = vsel %vm1408_vm15, %v5429_v42, %v1392_v57  ;;  %vm1906_vm14 = vcmp.eq.f32.partialorder %v4111_v9, 11.0  ;;  %v5431_v25 = vld [vmem:[#allocation37_spill] sm:$0xff] }
 0x1ad   : > { %v4614_v2 = vpop.permute.xlu1 %1982  ;;  %v1620_v44 = vsel %vm1516_vm3, %v5426_v53, %v1564_v23  ;;  %v1456_v15 = vsel %vm1352_vm13, %v5429_v42, %v1400_v29  ;;  %v4728_v36 = vsel %vm1906_vm14, %v4406_v1, %v4248_v46  ;;  %vm5430_vm0 = vcmp.eq.f32.partialorder %v4111_v9, 10.0  ;;  %v5432_v53 = vld [vmem:[#allocation26_spill] sm:$0xff] }
 0x1ae   : > { %v4734_v40 = vsel %vm5430_vm0, %v4406_v1, %v4253_v48  ;;  %v1668_v23 = vsel %vm1628_vm8, %v5431_v25, %v1612_v8  ;;  %vm1630_vm3 = vcmp.eq.f32.partialorder %v4577_v35, 6.0  ;;  %vm1520_vm12 = vcmp.eq.f32.partialorder %v4601_v54, 4.0  ;;  %v5433_v46 = vld [vmem:[#allocation34_spill] sm:$0xff] }
 0x1af   : > { %v1504_v57 = vsel %vm1464_vm4, %v5432_v53, %v1448_v11  ;;  %v1614_v29 = vsel %vm1574_vm5, %v5433_v46, %v1558_v17  ;;  %v1622_v48 = vsel %vm1518_vm10, %v5433_v46, %v1566_v51  ;;  %v1512_v1 = vsel %vm1408_vm15, %v5432_v53, %v1456_v15  ;;  %v5434_v15 = vld [vmem:[#allocation28_spill] sm:$0xff] }
 0x1b0   : > { %vm1907_vm7 = vcmp.eq.f32.partialorder %v4196_v30, 11.0  ;;  %v4756_v42 = vpop.permute.xlu0 %2086  ;;  %v1676_v11 = vsel %vm1572_vm9, %v5431_v25, %v1620_v44  ;;  %vm1686_vm13 = vcmp.eq.f32.partialorder %v4577_v35, 7.0  ;;  %v4772_v51 = vsel %vm1851_vm11, %v4450_v61, %v4558_v34  ;;  %v5436_v25 = vld [vmem:[#allocation39_spill] sm:$0xff] }
 0x1b1   : > { %v4654_v58 = vpop.permute.xlu1 %1990  ;;  %v4766_v17 = vsel %vm1907_vm7, %v4450_v61, %v4552_v16  ;;  %vm1576_vm10 = vcmp.eq.f32.partialorder %v4601_v54, 5.0  ;;  %v1560_v44 = vsel %vm1520_vm12, %v5434_v15, %v1504_v57  ;;  %vm1909_vm9 = vcmp.eq.f32.partialorder %v4284_v3, 11.0 }
 0x1b2   : > { %vm5435_vm15 = vcmp.eq.f32.partialorder %v4284_v3, 10.0  ;;  %v1670_v53 = vsel %vm1630_vm3, %v5436_v25, %v1614_v29  ;;  %v1678_v61 = vsel %vm1574_vm5, %v5436_v25, %v1622_v48  ;;  %v1568_v34 = vsel %vm1464_vm4, %v5434_v15, %v1512_v1 }
 0x1b3   : > { %v4783_v16 = vsel %vm5435_vm15, %v4502_v18, %v4394_v59  ;;  %v4798_v57 = vsel %vm1909_vm9, %v4502_v18, %v4413_v21  ;;  %vm1740_vm11 = vcmp.eq.f32.partialorder %v4309_v7, 8.0  ;;  %v5437_v59 = vld [vmem:[#allocation43_spill] sm:$0xff]  ;;  %vm1742_vm5 = vcmp.eq.f32.partialorder %v4577_v35, 8.0  ;;  %v5439_v21 = vld [vmem:[#allocation36_spill] sm:$0xff] }
 0x1b4   : > { %v1724_v46 = vsel %vm1684_vm1, %v5437_v59, %v1668_v23  ;;  %v1732_v29 = vsel %vm1628_vm8, %v5437_v59, %v1676_v11  ;;  %v4810_v1 = vpop.permute.xlu0 %2098  ;;  %vm1632_vm4 = vcmp.eq.f32.partialorder %v4601_v54, 6.0  ;;  %v1616_v18 = vsel %vm1576_vm10, %v5439_v21, %v1560_v44  ;;  %v5440_v11 = vld [vmem:[#allocation44_spill] sm:$0xff] }
 0x1b5   : > { %v4698_v41 = vpop.permute.xlu1 %1998  ;;  %5438 = vst [vmem:[#allocation38_spill] sm:$0xff] %v4810_v1  ;;  %vm5307_vm0 = vcmp.eq.f32.partialorder %v4345_v38, 11.0  ;;  %v4821_v23 = vsel %vm1855_vm2, %v4560_v50, %v4510_v19  ;;  %v1726_v15 = vsel %vm1686_vm13, %v5440_v11, %v1670_v53  ;;  %v1734_v25 = vsel %vm1630_vm3, %v5440_v11, %v1678_v61  ;;  %v5442_v53 = vld [vmem:[#allocation51_spill] sm:$0xff] }
 0x1b6   : > { %v1624_v44 = vsel %vm1520_vm12, %v5439_v21, %v1568_v34  ;;  %v4836_v59 = vsel %vm5307_vm0, %v4560_v50, %v4533_v6  ;;  %v5441_v19 = vmin.f32 %v4297_v13, 15.0  ;;  %vm1796_vm2 = vcmp.eq.f32.partialorder %v4309_v7, 9.0  ;;  %v5443_v6 = vld [vmem:[#allocation41_spill] sm:$0xff]  ;;  %v5444_v21 = vld [vmem:[#allocation52_spill] sm:$0xff] }
 0x1b7   : > { %v1780_v61 = vsel %vm1740_vm11, %v5442_v53, %v1724_v46  ;;  %v1788_v34 = vsel %vm1684_vm1, %v5442_v53, %v1732_v29  ;;  %vm1905_vm8 = vcmp.eq.f32.partialorder %v4301_v39, 11.0  ;;  %vm1852_vm3 = vcmp.eq.f32.partialorder %v4309_v7, 10.0 }
 0x1b8   : > { %v4841_v1 = vsub.f32 %v5441_v19, %v4345_v38  ;;  %vm1688_vm12 = vcmp.eq.f32.partialorder %v4601_v54, 7.0  ;;  %v1672_v13 = vsel %vm1632_vm4, %v5443_v6, %v1616_v18  ;;  %vm1798_vm15 = vcmp.eq.f32.partialorder %v4577_v35, 9.0  ;;  %v5445_v19 = vld [vmem:[#allocation53_spill] sm:$0xff] }
 0x1b9   : > { %v1782_v46 = vsel %vm1742_vm5, %v5444_v21, %v1726_v15  ;;  %v1790_v29 = vsel %vm1686_vm13, %v5444_v21, %v1734_v25  ;;  %v1680_v11 = vsel %vm1576_vm10, %v5443_v6, %v1624_v44  ;;  %v1836_v18 = vsel %vm1796_vm2, %v5445_v19, %v1780_v61  ;;  %v4876_v15 = vpop.permute.xlu0 %2106  ;;  %v5446_v61 = vld [vmem:[#allocation46_spill] sm:$0xff] }
 0x1ba   : > { %v4754_v8 = vpop.permute.xlu1 %2030  ;;  %v1844_v53 = vsel %vm1740_vm11, %v5445_v19, %v1788_v34  ;;  %vm1908_vm1 = vcmp.eq.f32.partialorder %v4309_v7, 11.0  ;;  %vm1854_vm0 = vcmp.eq.f32.partialorder %v4577_v35, 10.0  ;;  %v1892_v25 = vsel %vm1852_vm3, %v4293_v22, %v1836_v18 }
 0x1bb   : > { %v1900_v44 = vsel %vm1796_vm2, %v4293_v22, %v1844_v53  ;;  %vm1744_vm13 = vcmp.eq.f32.partialorder %v4601_v54, 8.0  ;;  %v1728_v34 = vsel %vm1688_vm12, %v5446_v61, %v1672_v13  ;;  %v1953_v6 = vsel %vm1849_vm6, %v4237_v0, %v4568_v37 }
 0x1bc   : > { %v1838_v21 = vsel %vm1798_vm15, %v4095_v20, %v1782_v46  ;;  %v1846_v19 = vsel %vm1742_vm5, %v4095_v20, %v1790_v29  ;;  %v1736_v22 = vsel %vm1632_vm4, %v5446_v61, %v1680_v11  ;;  %v1945_v13 = vsel %vm1905_vm8, %v4237_v0, %v4573_v31  ;;  %v5447_v0 = vld [vmem:[#allocation54_spill] sm:$0xff] }
 0x1bd   : > { %v1894_v37 = vsel %vm1854_vm0, %v4319_v32, %v1838_v21  ;;  %v1902_v46 = vsel %vm1798_vm15, %v4319_v32, %v1846_v19  ;;  %vm1910_vm6 = vcmp.eq.f32.partialorder %v4577_v35, 11.0  ;;  %v1948_v20 = vsel %vm1908_vm1, %v4269_v49, %v1892_v25 }
 0x1be   : > { %v4808_v48 = vpop.permute.xlu1 %2034  ;;  %v1956_v29 = vsel %vm1852_vm3, %v4269_v49, %v1900_v44  ;;  %vm1800_vm10 = vcmp.eq.f32.partialorder %v4601_v54, 9.0  ;;  %v1784_v31 = vsel %vm1744_vm13, %v5447_v0, %v1728_v34  ;;  %vm1856_vm11 = vcmp.eq.f32.partialorder %v4601_v54, 10.0  ;;  %v2139_v44 = vpop.permute.xlu0 %2138 }
 0x1bf   : > { %v1792_v32 = vsel %vm1688_vm12, %v5447_v0, %v1736_v22  ;;  %vm1961_vm5 = vcmp.eq.f32.partialorder %v4301_v39, 12.0  ;;  %v2009_v11 = vsel %vm1905_vm8, %v4584_v43, %v1953_v6  ;;  %v1950_v49 = vsel %vm1910_vm6, %v4305_v27, %v1894_v37 }
 0x1c0   : > { %v1958_v53 = vsel %vm1854_vm0, %v4305_v27, %v1902_v46  ;;  %vm1912_vm4 = vcmp.eq.f32.partialorder %v4601_v54, 11.0  ;;  %v2001_v25 = vsel %vm1961_vm5, %v4584_v43, %v1945_v13  ;;  %v1840_v61 = vsel %vm1800_vm10, %v4113_v56, %v1784_v31 }
 0x1c1   : > { %vm1962_vm2 = vcmp.eq.f32.partialorder %v4111_v9, 12.0  ;;  %v4948_v34 = vsel %vm1906_vm14, %v4408_v12, %v4734_v40  ;;  %vm1965_vm0 = vcmp.eq.f32.partialorder %v4284_v3, 12.0  ;;  %v1848_v43 = vsel %vm1744_vm13, %v4113_v56, %v1792_v32 }
 0x1c2   : > { %v4856_v50 = vpop.permute.xlu1 %2042  ;;  %v1896_v6 = vsel %vm1856_vm11, %v4359_v45, %v1840_v61  ;;  %vm2017_vm8 = vcmp.eq.f32.partialorder %v4301_v39, 13.0  ;;  %v2065_v21 = vsel %vm1961_vm5, %v4582_v55, %v2009_v11  ;;  %v1904_v40 = vsel %vm1800_vm10, %v4359_v45, %v1848_v43  ;;  %v2151_v46 = vpop.permute.xlu0 %2150 }
 0x1c3   : > { %v2057_v19 = vsel %vm2017_vm8, %v4582_v55, %v2001_v25  ;;  %vm2073_vm14 = vcmp.eq.f32.partialorder %v4301_v39, 14.0  ;;  %v2012_v56 = vsel %vm1908_vm1, %v4614_v2, %v1956_v29  ;;  %vm2129_vm3 = vcmp.eq.f32.partialorder %v4301_v39, 15.0 }
 0x1c4   : > { %v2185_v37 = vsub.f32 1.0, %v4639_v62  ;;  %v2002_v45 = vsel %vm1962_vm2, %v4408_v12, %v4728_v36  ;;  %vm1964_vm12 = vcmp.eq.f32.partialorder %v4309_v7, 12.0  ;;  %v1952_v29 = vsel %vm1912_vm4, %v4348_v14, %v1896_v6 }
 0x1c5   : > { %v4984_v39 = vsel %vm1965_vm0, %v4452_v63, %v4798_v57  ;;  %v2004_v32 = vsel %vm1964_vm12, %v4614_v2, %v1948_v20  ;;  %v1960_v36 = vsel %vm1856_vm11, %v4348_v14, %v1904_v40  ;;  %vm2020_vm15 = vcmp.eq.f32.partialorder %v4309_v7, 13.0  ;;  %v2960_v20 = vld [vmem:[%s3411_s6] sm:$0xff] }
 0x1c6   : > { %v4901_v18 = vpop.permute.xlu1 %2050  ;;  %v2068_v11 = vsel %vm1964_vm12, %v4591_v60, %v2012_v56  ;;  %vm1966_vm1 = vcmp.eq.f32.partialorder %v4577_v35, 12.0  ;;  %v2014_v2 = vsel %vm1910_vm6, %v4654_v58, %v1958_v53  ;;  %vm1963_vm13 = vcmp.eq.f32.partialorder %v4196_v30, 12.0  ;;  %v2159_v53 = vpop.permute.xlu0 %2158  ;;  %v2961_v56 = vld [vmem:[%s3411_s6 + $0x18] sm:$0xff] }
 0x1c7   : > { %v2006_v57 = vsel %vm1966_vm1, %v4654_v58, %v1950_v49  ;;  %v2060_v14 = vsel %vm2020_vm15, %v4591_v60, %v2004_v32  ;;  %vm2022_vm10 = vcmp.eq.f32.partialorder %v4577_v35, 13.0  ;;  %vm2076_vm11 = vcmp.eq.f32.partialorder %v4309_v7, 14.0 }
 0x1c8   : > { %vm2132_vm5 = vcmp.eq.f32.partialorder %v4309_v7, 15.0  ;;  %v2070_v60 = vsel %vm1966_vm1, %v4617_v5, %v2014_v2  ;;  %vm1968_vm6 = vcmp.eq.f32.partialorder %v4601_v54, 12.0  ;;  %v2016_v40 = vsel %vm1912_vm4, %v4698_v41, %v1960_v36  ;;  %v2962_v2 = vld [vmem:[%s3411_s6 + $0x28] sm:$0xff] }
 0x1c9   : > { %v2008_v7 = vsel %vm1968_vm6, %v4698_v41, %v1952_v29  ;;  %vm2018_vm4 = vcmp.eq.f32.partialorder %v4111_v9, 13.0  ;;  %vm2080_vm12 = vcmp.eq.f32.partialorder %v4601_v54, 14.0  ;;  %vm2074_vm1 = vcmp.eq.f32.partialorder %v4111_v9, 14.0 }
 0x1ca   : > { %v2167_v36 = vpop.permute.xlu0 %2166 }
 0x1cb   : > { %v2083_v27 = vpop.permute.xlu1 %2082 }
 0x1cc   : > { %v2121_v22 = vsel %vm2017_vm8, %v2083_v27, %v2065_v21  ;;  %v2113_v13 = vsel %vm2073_vm14, %v2083_v27, %v2057_v19  ;;  %v2062_v21 = vsel %vm2022_vm10, %v4617_v5, %v2006_v57  ;;  %vm2024_vm8 = vcmp.eq.f32.partialorder %v4601_v54, 13.0 }
 0x1cd   : > { %v2169_v55 = vsel %vm2129_vm3, %v2139_v44, %v2113_v13  ;;  %v2177_v0 = vsel %vm2073_vm14, %v2139_v44, %v2121_v22  ;;  %vm2078_vm14 = vcmp.eq.f32.partialorder %v4577_v35, 14.0  ;;  %vm2134_vm3 = vcmp.eq.f32.partialorder %v4577_v35, 15.0 }
 0x1ce   : > { %v2193_v12 = vmul.f32 %v2185_v37, %v2169_v55  ;;  %v2209_v44 = vmul.f32 %v2177_v0, %v4639_v62  ;;  %v2188_v62 = vsub.f32 1.0, %v4644_v26  ;;  %v2190_v5 = vsub.f32 1.0, %v4659_v47 }
 0x1cf   : > { %v4975_v31 = vpop.permute.xlu1 %2090  ;;  %v2064_v55 = vsel %vm2024_vm8, %v4688_v10, %v2008_v7  ;;  %v2072_v0 = vsel %vm1968_vm6, %v4688_v10, %v2016_v40  ;;  %v2066_v35 = vsel %vm1962_vm2, %v4754_v8, %v4948_v34  ;;  %v2192_v10 = vsub.f32 1.0, %v4682_v24  ;;  %v2964_v7 = vld [vmem:[%s3411_s6 + $0x8] sm:$0xff] }
 0x1d0   : > { %v2201_v25 = vadd.f32 %v2960_v20, %v2193_v12  ;;  %vm1967_vm2 = vcmp.eq.f32.partialorder %v4345_v38, 12.0  ;;  %vm2023_vm6 = vcmp.eq.f32.partialorder %v4345_v38, 13.0 }
 0x1d2   : > { %v2217_v49 = vadd.f32 %v2209_v44, %v2201_v25 }
 0x1d3   : > { %v2095_v61 = vpop.permute.xlu1 %2094 }
 0x1d4   : > { %v2116_v27 = vsel %vm2076_vm11, %v2095_v61, %v2060_v14  ;;  %v2124_v58 = vsel %vm2020_vm15, %v2095_v61, %v2068_v11  ;;  %2225 = vst [vmem:[%s5026_s9] sm:$0xff] %v2217_v49  ;;  %v2058_v11 = vsel %vm2018_vm4, %v4754_v8, %v2002_v45  ;;  %vm2136_vm15 = vcmp.eq.f32.partialorder %v4601_v54, 15.0 }
 0x1d5   : > { %v2172_v43 = vsel %vm2132_vm5, %v2151_v46, %v2116_v27  ;;  %v2180_v6 = vsel %vm2076_vm11, %v2151_v46, %v2124_v58  ;;  %v2013_v8 = vsel %vm1909_vm9, %v4452_v63, %v4783_v16  ;;  %v2003_v61 = vsel %vm1963_vm13, %v4597_v28, %v4766_v17  ;;  %v2963_v17 = vld [vmem:[%s3411_s6 + $0x38] sm:$0xff] }
 0x1d6   : > { %v2196_v19 = vmul.f32 %v2188_v62, %v2172_v43  ;;  %v2212_v37 = vmul.f32 %v2180_v6, %v4644_v26  ;;  %v2011_v54 = vsel %vm1907_vm7, %v4597_v28, %v4772_v51  ;;  %v2114_v63 = vsel %vm2074_vm1, %v4756_v42, %v2058_v11  ;;  %v2966_v11 = vld [vmem:[%s3411_s6 + $0x20] sm:$0xff] }
 0x1d7   : > { %v2103_v22 = vpop.permute.xlu1 %2102  ;;  %v2122_v16 = vsel %vm2018_vm4, %v4756_v42, %v2066_v35  ;;  %vm2019_vm9 = vcmp.eq.f32.partialorder %v4196_v30, 13.0  ;;  %v2186_v28 = vsub.f32 1.0, %v4629_v52  ;;  %v2067_v42 = vsel %vm1963_vm13, %v4808_v48, %v2011_v54 }
 0x1d8   : > { %v2204_v13 = vadd.f32 %v2961_v56, %v2196_v19  ;;  %v2118_v46 = vsel %vm2078_vm14, %v2103_v22, %v2062_v21  ;;  %v2126_v41 = vsel %vm2022_vm10, %v2103_v22, %v2070_v60  ;;  %vm2130_vm10 = vcmp.eq.f32.partialorder %v4111_v9, 15.0 }
 0x1d9   : > { %v2174_v29 = vsel %vm2134_vm3, %v2159_v53, %v2118_v46  ;;  %v2182_v32 = vsel %vm2078_vm14, %v2159_v53, %v2126_v41  ;;  %v2059_v62 = vsel %vm2019_vm9, %v4808_v48, %v2003_v61  ;;  %vm2021_vm7 = vcmp.eq.f32.partialorder %v4284_v3, 13.0  ;;  %v2965_v46 = vld [vmem:[%s3411_s6 + $0x10] sm:$0xff] }
 0x1da   : > { %v2220_v26 = vadd.f32 %v2212_v37, %v2204_v13  ;;  %v2198_v12 = vmul.f32 %v2190_v5, %v2174_v29  ;;  %v2214_v34 = vmul.f32 %v2182_v32, %v4659_v47  ;;  %vm2075_vm11 = vcmp.eq.f32.partialorder %v4196_v30, 14.0  ;;  %v5449_v37 = vld [vmem:[#allocation38_spill] sm:$0xff] }
 0x1db   : > { %v2111_v57 = vpop.permute.xlu1 %2110  ;;  %v2061_v6 = vsel %vm2021_vm7, %v4856_v50, %v4984_v39  ;;  %v2069_v21 = vsel %vm1965_vm0, %v4856_v50, %v2013_v8  ;;  %v2115_v9 = vsel %vm2075_vm11, %v4975_v31, %v2059_v62  ;;  %v2123_v48 = vsel %vm2019_vm9, %v4975_v31, %v2067_v42 }
 0x1dc   : > { %2228 = vst [vmem:[%s5026_s9 + $0x18] sm:$0xff] %v2220_v26  ;;  %v2206_v20 = vadd.f32 %v2962_v2, %v2198_v12  ;;  %v2120_v25 = vsel %vm2080_vm12, %v2111_v57, %v2064_v55  ;;  %v2128_v44 = vsel %vm2024_vm8, %v2111_v57, %v2072_v0  ;;  %vm2131_vm13 = vcmp.eq.f32.partialorder %v4196_v30, 15.0  ;;  %v5450_v0 = vld [vmem:[#allocation31_spill] sm:$0xff] }
 0x1dd   : > { %v2176_v45 = vsel %vm2136_vm15, %v2167_v36, %v2120_v25  ;;  %v2184_v14 = vsel %vm2080_vm12, %v2167_v36, %v2128_v44  ;;  %v2187_v50 = vsub.f32 1.0, %v4649_v33  ;;  %v2007_v31 = vsel %vm1967_vm2, %v4528_v4, %v4836_v59 }
 0x1de   : > { %v2222_v47 = vadd.f32 %v2214_v34, %v2206_v20  ;;  %v2200_v49 = vmul.f32 %v2192_v10, %v2176_v45  ;;  %v2216_v58 = vmul.f32 %v2184_v14, %v4682_v24  ;;  %vm5448_vm0 = vcmp.eq.f32.partialorder %v4345_v38, 11.0 }
 0x1df   : > { %v2015_v22 = vsel %vm5448_vm0, %v4528_v4, %v4821_v23  ;;  %vm2077_vm5 = vcmp.eq.f32.partialorder %v4284_v3, 14.0  ;;  %v2125_v4 = vsel %vm2021_vm7, %v5449_v37, %v2069_v21  ;;  %v2063_v30 = vsel %vm2023_vm6, %v4901_v18, %v2007_v31 }
 0x1e0   : > { %2230 = vst [vmem:[%s5026_s9 + $0x28] sm:$0xff] %v2222_v47  ;;  %v2208_v27 = vadd.f32 %v2963_v17, %v2200_v49  ;;  %v2143_v51 = vpop.permute.xlu1 %2142  ;;  %v2117_v59 = vsel %vm2077_vm5, %v5449_v37, %v2061_v6  ;;  %v2071_v23 = vsel %vm1967_vm2, %v4901_v18, %v2015_v22  ;;  %vm2133_vm8 = vcmp.eq.f32.partialorder %v4284_v3, 15.0 }
 0x1e1   : > { %v2170_v53 = vsel %vm2130_vm10, %v2143_v51, %v2114_v63  ;;  %v2178_v24 = vsel %vm2074_vm1, %v2143_v51, %v2122_v16  ;;  %v2189_v29 = vsub.f32 1.0, %v5450_v0  ;;  %vm2079_vm14 = vcmp.eq.f32.partialorder %v4345_v38, 14.0 }
 0x1e2   : > { %v2224_v60 = vadd.f32 %v2216_v58, %v2208_v27  ;;  %v2194_v43 = vmul.f32 %v2186_v28, %v2170_v53  ;;  %v2210_v39 = vmul.f32 %v2178_v24, %v4629_v52  ;;  %v2119_v36 = vsel %vm2079_vm14, %v4876_v15, %v2063_v30 }
 0x1e3   : > { %vm2135_vm3 = vcmp.eq.f32.partialorder %v4345_v38, 15.0  ;;  %v2191_v10 = vsub.f32 1.0, %v4841_v1 }
 0x1e4   : > { %2232 = vst [vmem:[%s5026_s9 + $0x38] sm:$0xff] %v2224_v60  ;;  %v2202_v40 = vadd.f32 %v2964_v7, %v2194_v43  ;;  %v2147_v19 = vpop.permute.xlu1 %2146 }
 0x1e5   : > { %v2171_v5 = vsel %vm2131_vm13, %v2147_v19, %v2115_v9  ;;  %v2179_v52 = vsel %vm2075_vm11, %v2147_v19, %v2123_v48 }
 0x1e6   : > { %v2218_v56 = vadd.f32 %v2210_v39, %v2202_v40  ;;  %v2195_v13 = vmul.f32 %v2187_v50, %v2171_v5  ;;  %v2211_v55 = vmul.f32 %v2179_v52, %v4649_v33  ;;  %v2127_v33 = vsel %vm2023_vm6, %v4876_v15, %v2071_v23  ;;  %v2967_v15 = vld [vmem:[%s3411_s6 + $0x30] sm:$0xff]  ;;  %s2972_s6 = sshll.u32 %s3094_s5, 4  ;;  %s2973_s6 = int_to_ptr.vmem [resolvable:$false] %s2972_s6 }
 0x1e7   : > { %s2974_s16 = scalar_lea.vmem %s2973_s6, 2048  ;;  %p2975_p6 = scmp.lt.s32.totalorder %s5166_s15, %s2973_s6 }
 0x1e8   : > { %2226 = vst [vmem:[%s5026_s9 + $0x8] sm:$0xff] %v2218_v56  ;;  %v2203_v41 = vadd.f32 %v2965_v46, %v2195_v13  ;;  %v2155_v32 = vpop.permute.xlu1 %2154  ;;  %p2976_p8 = scmp.lt.s32.totalorder %s2974_s16, %s2968_s30 }
 0x1e9   : > { %v2173_v35 = vsel %vm2133_vm8, %v2155_v32, %v2117_v59  ;;  %v2181_v26 = vsel %vm2077_vm5, %v2155_v32, %v2125_v4 }
 0x1ea   : > { %v2219_v18 = vadd.f32 %v2211_v55, %v2203_v41  ;;  %v2197_v12 = vmul.f32 %v2189_v29, %v2173_v35  ;;  %v2213_v3 = vmul.f32 %v2181_v26, %v5450_v0  ;;  %p2977_p9 = por %p2976_p8, %p2975_p6 }
 0x1ec   : > { %2227 = vst [vmem:[%s5026_s9 + $0x10] sm:$0xff] %v2219_v18  ;;  %v2205_v57 = vadd.f32 %v2966_v11, %v2197_v12  ;;  %v2163_v2 = vpop.permute.xlu1 %2162  ;;  %p2978_p10 = pnand %p2977_p9, %p2971_p4 }
 0x1ed   : > { %v2175_v20 = vsel %vm2135_vm3, %v2163_v2, %v2119_v36  ;;  %v2183_v34 = vsel %vm2079_vm14, %v2163_v2, %v2127_v33 }
 0x1ee   : > { %v2221_v25 = vadd.f32 %v2213_v3, %v2205_v57  ;;  %v2199_v44 = vmul.f32 %v2191_v10, %v2175_v20  ;;  %v2215_v8 = vmul.f32 %v2183_v34, %v4841_v1 }
 0x1f0   : > { %2229 = vst [vmem:[%s5026_s9 + $0x20] sm:$0xff] %v2221_v25  ;;  %v2207_v38 = vadd.f32 %v2967_v15, %v2199_v44 }
 0x1f2   : > { %v2223_v45 = vadd.f32 %v2215_v8, %v2207_v38 }
 0x1f4   : > { %2231 = vst [vmem:[%s5026_s9 + $0x30] sm:$0xff] %v2223_v45 }
 0x1f5   : > { %2981 = shalt.err (!%p2978_p10)
}
 0x1f6   : > { %s2982_s4 = scalar_lea.hbm %s5161_s29, 1024  ;;  %s2986_s17 = scalar_lea.hbm %s5231_s3, 32768 }
 0x1f7   : > { %p2983_p11 = scmp.ne.s32.totalorder %s5161_s29, %s2982_s4  ;;  %p2987_p0 = scmp.lt.s32.totalorder %s5161_s29, %s5231_s3 }
 0x1f8   : > { %p2988_p1 = scmp.lt.s32.totalorder %s2986_s17, %s2982_s4 }
 0x1f9   : > { %p2984_p12 = pnand %p2983_p11, %p3179_p5 }
 0x1fa   : > { %p2989_p2 = por %p2988_p1, %p2987_p0 }
 0x1fb   : > { %p2985_p13 = pneg %p2984_p12 }
 0x1fd   : > { %p2990_p3 = pnand %p2989_p2, %p2985_p13 }
 0x1ff   : > { %2993 = shalt.err (!%p2990_p3)
}
 0x200   : > { %s3095_s25 = smov 128   ;;  %s3096_s30 = smov 8  }
 0x201   : > { %2799 = dma.vmem_to_hbm [thread:$0]  (%p3179_p5), %s5166_s15, 1024, %s5161_s29, %s5171_s10, %s3095_s25, %s3095_s25, %s3096_s30  }
 0x202 PF: > { %p2805_p4 = scmp.ge.s32.totalorder %s3076_s21, 2  ;;  %s2266_s5 = sand.u32 1, %s3040_s12  }
 0x203   : > { %s2267_s6 = scalar_lea.sflag [#allocation3], %s2266_s5 }
 0x204   : > { %p2802_p6 = pnand %p2805_p4, %p3186_p7 }
 0x206   : > { %p2803_p8 = pneg %p2802_p6 }
 0x208   : > { %3035 = dma.done.wait (%p2803_p8), %s2267_s6, 1024  }
 0x209   : > { %3037 = vsyncadd (%p2803_p8), %s2267_s6, 4294966272  ;;  %s16_s21 = sadd.s32 1, %s3076_s21   ;;  %s5451_s12 = smov %s3044_s13 }
 0x20a   : > { %p13_p9 = scmp.ge.s32.totalorder %s16_s21, 34   ;;  %s5452_s13 = smov %s3048_s14 }
 0x20b   : > { %s5453_s14 = smov %s3202_s8  ;;  %s5454_s15 = smov %s3064_s18 }
 0x20c   : > { %s5455_s16 = smov %s3068_s19  ;;  %s5456_s17 = smov %s3072_s20 }
 0x20d   : > { %s5457_s18 = smov %s5461_s23  ;;  %s5458_s19 = smov %s5465_s24 }
 0x20e   : > { %s5459_s20 = smov %s5469_s26  ;;  %15 = sbr.rel (!%p13_p9) target bundleno = 6 (0x6), region = 71 }
 0x213   :  { %2272 = vsyncpa [#allocation3], 1 }
 0x214   :  { %2274 = vsyncpa [#allocation3 + $0x1], 1 }

</bundles_post_ra>
